<compile_context>
chip_gen: v6e
topology: v6e:2x2x1
jax: 0.10.0
libtpu: 0.0.40
codegen_flags: <defaults>
</compile_context>

<pallas_src>
import functools

import jax
import jax.numpy as jnp
from jax.experimental import pallas as pl
from jax.experimental.pallas import tpu as pltpu

EPS = 1e-5
_LANE = 128


def _round_up(x, m):
    return (x + m - 1) // m * m


def _chan_align(dtype):
    # Sublane alignment of matmul operands: 8 rows for 4-byte dtypes, 16 only
    # for 2-byte (bf16) packing.  (Review: don't pay 16 on the f32 path.)
    return 8 if jnp.dtype(dtype).itemsize >= 4 else 16


def _lane_dense_dims(H, W):
    hp, wp = H + 2, W + 2
    return hp, wp, _round_up(hp * wp, _LANE)


# ---------------------------------------------------------------------------
# Kernel
# ---------------------------------------------------------------------------
def _double_conv_kernel(x_ref, w1_ref, g1_ref, b1_ref, w2_ref, g2_ref, b2_ref,
                        mrow_ref, mcol_ref, out_ref, *, wp, inv_n, out_rows):
    """conv3x3 -> BN(train stats) -> ReLU -> conv3x3 -> BN -> ReLU, fused.

    All feature maps are lane-dense (C_pad, P): channels on sublanes, the
    zero-padded spatial grid flattened onto the LANE axis, so every VPU op and
    the output store are full-width (multiple-of-128) vector ops.
    """
    P = x_ref.shape[1]
    cdt = w1_ref.dtype
    mrow = mrow_ref[...]            # (1, P) f32, 1.0 on the H*W interior pixels
    mcol = mcol_ref[...]            # (P, 1) f32, same mask as an MXU column

    def conv3x3(src, w_ref):
        # Tap (dy, dx) of output pixel p reads flat-padded pixel
        # p + (dy-1)*wp + (dx-1): a pure lane rotation of the whole map.
        # 9 accumulating per-tap MXU dots -> no im2col scratch, no full-map
        # store sweeps.  Rotation wrap-around only contaminates halo / tail
        # positions, which are excluded from the statistics and re-zeroed by
        # the epilogue mask before being used as the next conv's input.
        acc = None
        for t in range(9):
            dy, dx = divmod(t, 3)
            shift = (-((dy - 1) * wp + (dx - 1))) % P
            tap = src if shift == 0 else pltpu.roll(src, shift, axis=1)
            d = jnp.dot(w_ref[t], tap, preferred_element_type=jnp.float32)
            acc = d if acc is None else acc + d
        return acc

    def bn_affine(acc, gamma, beta):
        # Training-mode BatchNorm over the H*W interior pixels (batch == 1),
        # biased variance, folded into a single per-channel affine.  Masked
        # sum / sum-of-squares go through the MXU (mask-column dot, N=1)
        # instead of an XLU lane reduction: the 2 XLUs are already busy with
        # the 9 rolls per conv (review: v6e / v7x).
        s = jnp.dot(acc, mcol, preferred_element_type=jnp.float32)          # (C, 1)
        ss = jnp.dot(acc * acc, mcol, preferred_element_type=jnp.float32)   # (C, 1)
        mean = s * inv_n
        var = jnp.maximum(ss * inv_n - mean * mean, 0.0)
        scale = gamma * jax.lax.rsqrt(var + EPS)
        return scale, beta - mean * scale

    # ---- conv1 -> BN1 -> ReLU (fused epilogue) ------------------------------
    acc1 = conv3x3(x_ref[...].astype(cdt), w1_ref)      # in-kernel operand cast
    sc1, sh1 = bn_affine(acc1, g1_ref[...], b1_ref[...])
    # The mask re-zeroes halo + lane tail, so y1 is already conv2's zero-padded
    # lane-dense input; affine + ReLU + mask + cast in one expression.
    y1 = (jnp.maximum(acc1 * sc1 + sh1, 0.0) * mrow).astype(cdt)

    # ---- conv2 -> BN2 -> ReLU ----------------------------------------------
    acc2 = conv3x3(y1, w2_ref)
    sc2, sh2 = bn_affine(acc2, g2_ref[...], b2_ref[...])
    # Masked output: halo / tail lanes are exactly zero, so this slab can feed
    # a following lane-dense layer directly (no host pad / slice HBM passes).
    y2 = jnp.maximum(acc2 * sc2 + sh2, 0.0) * mrow
    out_ref[...] = y2[:out_rows]


# ---------------------------------------------------------------------------
# Host-side packing / wrappers
# ---------------------------------------------------------------------------
def prepare_double_conv_params(w1, g1, b1, w2, g2, b2,
                               compute_dtype=jnp.bfloat16):
    """One-time (per layer) packing of conv weights and BN affine params."""
    cout, cin = int(w1.shape[0]), int(w1.shape[1])
    align = _chan_align(compute_dtype)
    cin_p, cout_p = _round_up(cin, align), _round_up(cout, align)

    def pack_weight(w, ci_p):
        # (Cout, Cin, 3, 3) -> (9, cout_p, ci_p); tap index t = dy*3 + dx.
        co, ci = int(w.shape[0]), int(w.shape[1])
        m = jnp.zeros((9, cout_p, ci_p), jnp.float32)
        m = m.at[:, :co, :ci].set(
            jnp.transpose(w.astype(jnp.float32), (2, 3, 0, 1)).reshape(9, co, ci))
        return m.astype(compute_dtype)

    def pack_affine(v):
        # Pad channels get gamma=0, beta=0 -> padded output rows are exactly 0.
        return jnp.zeros((cout_p, 1), jnp.float32).at[:cout, 0].set(
            v.astype(jnp.float32))

    return {
        "cin": cin, "cout": cout, "cin_p": cin_p, "cout_p": cout_p,
        "out_rows": _round_up(cout, 8), "compute_dtype": compute_dtype,
        "w1": pack_weight(w1, cin_p), "w2": pack_weight(w2, cout_p),
        "g1": pack_affine(g1), "b1": pack_affine(b1),
        "g2": pack_affine(g2), "b2": pack_affine(b2),
    }


def make_interior_masks(H, W):
    """(1, P) row mask and (P, 1) MXU-column mask over the padded flat grid."""
    hp, wp, P = _lane_dense_dims(H, W)
    m = jnp.zeros((hp, wp), jnp.float32).at[1:H + 1, 1:W + 1].set(1.0)
    flat = jnp.pad(m.reshape(hp * wp), (0, P - hp * wp))
    return flat.reshape(1, P), flat.reshape(P, 1)


def pack_input(x_chw, cin_p):
    """(C, H, W) -> channel-padded, spatially zero-padded, lane-flat f32 slab."""
    c, H, W = x_chw.shape
    hp, wp, P = _lane_dense_dims(H, W)
    xp = jnp.pad(x_chw.astype(jnp.float32), ((0, cin_p - c), (1, 1), (1, 1)))
    return jnp.pad(xp.reshape(cin_p, hp * wp), ((0, 0), (0, P - hp * wp)))


def unpack_output(y_slab, cout, H, W):
    hp, wp, P = _lane_dense_dims(H, W)
    return y_slab[:cout, :hp * wp].reshape(cout, hp, wp)[:, 1:H + 1, 1:W + 1]


def _vmem_limit_bytes(cin_p, cout_p, out_rows, P, compute_dtype):
    """Scoped-VMEM request derived from the actual kernel footprint."""
    cb = jnp.dtype(compute_dtype).itemsize
    footprint = (
        cin_p * P * 4                           # f32 input slab
        + cin_p * P * cb                        # in-kernel cast of the input
        + cin_p * P * cb                        # rolled-tap temporary
        + 9 * cout_p * (cin_p + cout_p) * cb    # per-tap weights
        + 2 * cout_p * P * 4                    # live f32 accumulator + dot out
        + cout_p * P * cb                       # y1 slab
        + out_rows * P * 4                      # output slab
        + P * 4 * 136                           # masks ((P,1) pads to 128 lanes)
        + 4 * cout_p * _LANE * 4                # BN affine params
    )
    limit = max(2 * footprint, 32 * 1024 * 1024)    # 2x for compiler temporaries
    cap = 100 * 1024 * 1024                         # ~100 MiB on 128 MiB parts
    try:                                            # stay below physical VMEM (64 MiB on v7x)
        cap = min(cap, int(pltpu.get_tpu_info().vmem_capacity_bytes) * 7 // 8)
    except Exception:
        pass
    return min(limit, cap)


def double_conv2d_apply(x_slab, H, W, params):
    """Lane-dense slab in -> masked lane-dense slab out (both f32).

    x_slab: (cin_p, P) f32 with zero halo/tail (from pack_input or from a
    previous lane-dense layer).  Returns (round_up(cout, 8), P) f32 with zero
    halo/tail, directly consumable by a following lane-dense conv layer, so
    chained DoubleConv blocks skip the host pad / slice HBM passes entirely.
    """
    cin_p, cout_p = params["cin_p"], params["cout_p"]
    out_rows, cdt = params["out_rows"], params["compute_dtype"]
    hp, wp, P = _lane_dense_dims(H, W)
    assert x_slab.shape == (cin_p, P), (x_slab.shape, (cin_p, P))

    mrow, mcol = make_interior_masks(H, W)
    kernel = functools.partial(_double_conv_kernel, wp=wp,
                               inv_n=1.0 / (H * W), out_rows=out_rows)
    vmem = pl.BlockSpec(memory_space=pltpu.MemorySpace.VMEM)
    return pl.pallas_call(
        kernel,
        out_shape=jax.ShapeDtypeStruct((out_rows, P), jnp.float32),
        in_specs=[vmem] * 9,
        out_specs=vmem,
        compiler_params=pltpu.CompilerParams(
            vmem_limit_bytes=_vmem_limit_bytes(cin_p, cout_p, out_rows, P, cdt)),
    )(x_slab, params["w1"], params["g1"], params["b1"],
      params["w2"], params["g2"], params["b2"], mrow, mcol)


def double_conv2d(x_chw, w1, g1, b1, w2, g2, b2, compute_dtype=jnp.bfloat16):
    """(Cin, H, W) f32 -> (Cout, H, W) f32, matching the PyTorch forward."""
    params = prepare_double_conv_params(w1, g1, b1, w2, g2, b2, compute_dtype)
    _, H, W = x_chw.shape
    y_slab = double_conv2d_apply(pack_input(x_chw, params["cin_p"]), H, W, params)
    return unpack_output(y_slab, params["cout"], H, W)


# ---------------------------------------------------------------------------
# Pure-JAX reference of the PyTorch forward (training-mode BatchNorm)
# ---------------------------------------------------------------------------
def reference(x_chw, w1, g1, b1, w2, g2, b2):
    def conv(x, w):
        y = jax.lax.conv_general_dilated(
            x[None], w, window_strides=(1, 1), padding=((1, 1), (1, 1)),
            dimension_numbers=('NCHW', 'OIHW', 'NCHW'))
        return y[0]

    def bn_relu(x, g, b):
        mean = x.mean(axis=(1, 2), keepdims=True)
        var = ((x - mean) ** 2).mean(axis=(1, 2), keepdims=True)
        y = (x - mean) / jnp.sqrt(var + EPS) * g[:, None, None] + b[:, None, None]
        return jnp.maximum(y, 0.0)

    y = bn_relu(conv(x_chw, w1), g1, b1)
    y = bn_relu(conv(y, w2), g2, b2)
    return y


if __name__ == "__main__":
    Cin, Cout, H, W = 4, 8, 16, 16
    key = jax.random.PRNGKey(0)
    kx, kw1, kw2, kg1, kb1, kg2, kb2 = jax.random.split(key, 7)

    x = jax.random.normal(kx, (Cin, H, W), dtype=jnp.float32)
    # Conv2d weights (no bias), PyTorch OIHW layout.
    w1 = jax.random.normal(kw1, (Cout, Cin, 3, 3), dtype=jnp.float32) * 0.1
    w2 = jax.random.normal(kw2, (Cout, Cout, 3, 3), dtype=jnp.float32) * 0.1
    # BatchNorm affine params (perturbed from the default gamma=1, beta=0).
    g1 = 1.0 + 0.1 * jax.random.normal(kg1, (Cout,), dtype=jnp.float32)
    b1 = 0.1 * jax.random.normal(kb1, (Cout,), dtype=jnp.float32)
    g2 = 1.0 + 0.1 * jax.random.normal(kg2, (Cout,), dtype=jnp.float32)
    b2 = 0.1 * jax.random.normal(kb2, (Cout,), dtype=jnp.float32)

    ref = jax.block_until_ready(reference(x, w1, g1, b1, w2, g2, b2))

    # f32 MXU operands: parity / debug mode matching the f32 PyTorch module.
    out_f32 = jax.block_until_ready(
        double_conv2d(x, w1, g1, b1, w2, g2, b2, compute_dtype=jnp.float32))
    assert out_f32.shape == (Cout, H, W)
    err32 = float(jnp.max(jnp.abs(out_f32 - ref)))
    assert jnp.allclose(out_f32, ref, rtol=5e-3, atol=5e-3), (
        f"f32 kernel mismatch vs reference, max abs err = {err32:.3e}")

    # bf16 MXU operands (production default, review-recommended); tolerance
    # reflects bf16 operand rounding through two conv + BN layers.
    out_bf16 = jax.block_until_ready(
        double_conv2d(x, w1, g1, b1, w2, g2, b2, compute_dtype=jnp.bfloat16))
    errbf = float(jnp.max(jnp.abs(out_bf16 - ref)))
    assert jnp.allclose(out_bf16, ref, rtol=6e-2, atol=6e-2), (
        f"bf16 kernel mismatch vs reference, max abs err = {errbf:.3e}")

    print("KERNEL_OK")
</pallas_src>

<mosaic_0001>
module attributes {stable_mosaic.version = 11 : i64} {
  func.func @_double_conv_kernel(%arg0: memref<8x384xf32, #tpu.memory_space<vmem>>, %arg1: memref<9x8x8xf32, #tpu.memory_space<vmem>>, %arg2: memref<8x1xf32, #tpu.memory_space<vmem>>, %arg3: memref<8x1xf32, #tpu.memory_space<vmem>>, %arg4: memref<9x8x8xf32, #tpu.memory_space<vmem>>, %arg5: memref<8x1xf32, #tpu.memory_space<vmem>>, %arg6: memref<8x1xf32, #tpu.memory_space<vmem>>, %arg7: memref<1x384xf32, #tpu.memory_space<vmem>>, %arg8: memref<384x1xf32, #tpu.memory_space<vmem>>, %arg9: memref<8x384xf32, #tpu.memory_space<vmem>>) attributes {dimension_semantics = [], scalar_prefetch = 0 : i64, scratch_operands = 0 : i64, tpu.core_type = #tpu.core_type<tc>} {
    %c0 = arith.constant 0 : index
    %c0_0 = arith.constant 0 : index
    %0 = vector.load %arg7[%c0, %c0_0] : memref<1x384xf32, #tpu.memory_space<vmem>>, vector<1x384xf32>
    %c0_1 = arith.constant 0 : index
    %c0_2 = arith.constant 0 : index
    %1 = vector.load %arg8[%c0_1, %c0_2] : memref<384x1xf32, #tpu.memory_space<vmem>>, vector<384x1xf32>
    %c0_3 = arith.constant 0 : index
    %c0_4 = arith.constant 0 : index
    %2 = vector.load %arg0[%c0_3, %c0_4] : memref<8x384xf32, #tpu.memory_space<vmem>>, vector<8x384xf32>
    %c19_i32 = arith.constant 19 : i32
    %3 = tpu.dynamic_rotate %2 by %c19_i32 dim 1 : vector<8x384xf32>, i32 -> vector<8x384xf32>
    %c0_5 = arith.constant 0 : index
    %c0_6 = arith.constant 0 : index
    %c0_7 = arith.constant 0 : index
    %4 = vector.load %arg1[%c0_5, %c0_6, %c0_7] : memref<9x8x8xf32, #tpu.memory_space<vmem>>, vector<1x8x8xf32>
    %5 = vector.shape_cast %4 : vector<1x8x8xf32> to vector<8x8xf32>
    %cst = arith.constant dense<0.000000e+00> : vector<8x384xf32>
    %6 = tpu.matmul %5, %3, %cst {dimension_numbers = #tpu.dot_dimension_numbers<[1], [0], [0], [1], [0, 0, 1, 1], [], []>} : vector<8x8xf32>, vector<8x384xf32>, vector<8x384xf32> -> vector<8x384xf32>
    %c18_i32 = arith.constant 18 : i32
    %7 = tpu.dynamic_rotate %2 by %c18_i32 dim 1 : vector<8x384xf32>, i32 -> vector<8x384xf32>
    %c1 = arith.constant 1 : index
    %c0_8 = arith.constant 0 : index
    %c0_9 = arith.constant 0 : index
    %8 = vector.load %arg1[%c1, %c0_8, %c0_9] : memref<9x8x8xf32, #tpu.memory_space<vmem>>, vector<1x8x8xf32>
    %9 = vector.shape_cast %8 : vector<1x8x8xf32> to vector<8x8xf32>
    %cst_10 = arith.constant dense<0.000000e+00> : vector<8x384xf32>
    %10 = tpu.matmul %9, %7, %cst_10 {dimension_numbers = #tpu.dot_dimension_numbers<[1], [0], [0], [1], [0, 0, 1, 1], [], []>} : vector<8x8xf32>, vector<8x384xf32>, vector<8x384xf32> -> vector<8x384xf32>
    %11 = arith.addf %6, %10 : vector<8x384xf32>
    %c17_i32 = arith.constant 17 : i32
    %12 = tpu.dynamic_rotate %2 by %c17_i32 dim 1 : vector<8x384xf32>, i32 -> vector<8x384xf32>
    %c2 = arith.constant 2 : index
    %c0_11 = arith.constant 0 : index
    %c0_12 = arith.constant 0 : index
    %13 = vector.load %arg1[%c2, %c0_11, %c0_12] : memref<9x8x8xf32, #tpu.memory_space<vmem>>, vector<1x8x8xf32>
    %14 = vector.shape_cast %13 : vector<1x8x8xf32> to vector<8x8xf32>
    %cst_13 = arith.constant dense<0.000000e+00> : vector<8x384xf32>
    %15 = tpu.matmul %14, %12, %cst_13 {dimension_numbers = #tpu.dot_dimension_numbers<[1], [0], [0], [1], [0, 0, 1, 1], [], []>} : vector<8x8xf32>, vector<8x384xf32>, vector<8x384xf32> -> vector<8x384xf32>
    %16 = arith.addf %11, %15 : vector<8x384xf32>
    %c1_i32 = arith.constant 1 : i32
    %17 = tpu.dynamic_rotate %2 by %c1_i32 dim 1 : vector<8x384xf32>, i32 -> vector<8x384xf32>
    %c3 = arith.constant 3 : index
    %c0_14 = arith.constant 0 : index
    %c0_15 = arith.constant 0 : index
    %18 = vector.load %arg1[%c3, %c0_14, %c0_15] : memref<9x8x8xf32, #tpu.memory_space<vmem>>, vector<1x8x8xf32>
    %19 = vector.shape_cast %18 : vector<1x8x8xf32> to vector<8x8xf32>
    %cst_16 = arith.constant dense<0.000000e+00> : vector<8x384xf32>
    %20 = tpu.matmul %19, %17, %cst_16 {dimension_numbers = #tpu.dot_dimension_numbers<[1], [0], [0], [1], [0, 0, 1, 1], [], []>} : vector<8x8xf32>, vector<8x384xf32>, vector<8x384xf32> -> vector<8x384xf32>
    %21 = arith.addf %16, %20 : vector<8x384xf32>
    %c4 = arith.constant 4 : index
    %c0_17 = arith.constant 0 : index
    %c0_18 = arith.constant 0 : index
    %22 = vector.load %arg1[%c4, %c0_17, %c0_18] : memref<9x8x8xf32, #tpu.memory_space<vmem>>, vector<1x8x8xf32>
    %23 = vector.shape_cast %22 : vector<1x8x8xf32> to vector<8x8xf32>
    %cst_19 = arith.constant dense<0.000000e+00> : vector<8x384xf32>
    %24 = tpu.matmul %23, %2, %cst_19 {dimension_numbers = #tpu.dot_dimension_numbers<[1], [0], [0], [1], [0, 0, 1, 1], [], []>} : vector<8x8xf32>, vector<8x384xf32>, vector<8x384xf32> -> vector<8x384xf32>
    %25 = arith.addf %21, %24 : vector<8x384xf32>
    %c383_i32 = arith.constant 383 : i32
    %26 = tpu.dynamic_rotate %2 by %c383_i32 dim 1 : vector<8x384xf32>, i32 -> vector<8x384xf32>
    %c5 = arith.constant 5 : index
    %c0_20 = arith.constant 0 : index
    %c0_21 = arith.constant 0 : index
    %27 = vector.load %arg1[%c5, %c0_20, %c0_21] : memref<9x8x8xf32, #tpu.memory_space<vmem>>, vector<1x8x8xf32>
    %28 = vector.shape_cast %27 : vector<1x8x8xf32> to vector<8x8xf32>
    %cst_22 = arith.constant dense<0.000000e+00> : vector<8x384xf32>
    %29 = tpu.matmul %28, %26, %cst_22 {dimension_numbers = #tpu.dot_dimension_numbers<[1], [0], [0], [1], [0, 0, 1, 1], [], []>} : vector<8x8xf32>, vector<8x384xf32>, vector<8x384xf32> -> vector<8x384xf32>
    %30 = arith.addf %25, %29 : vector<8x384xf32>
    %c367_i32 = arith.constant 367 : i32
    %31 = tpu.dynamic_rotate %2 by %c367_i32 dim 1 : vector<8x384xf32>, i32 -> vector<8x384xf32>
    %c6 = arith.constant 6 : index
    %c0_23 = arith.constant 0 : index
    %c0_24 = arith.constant 0 : index
    %32 = vector.load %arg1[%c6, %c0_23, %c0_24] : memref<9x8x8xf32, #tpu.memory_space<vmem>>, vector<1x8x8xf32>
    %33 = vector.shape_cast %32 : vector<1x8x8xf32> to vector<8x8xf32>
    %cst_25 = arith.constant dense<0.000000e+00> : vector<8x384xf32>
    %34 = tpu.matmul %33, %31, %cst_25 {dimension_numbers = #tpu.dot_dimension_numbers<[1], [0], [0], [1], [0, 0, 1, 1], [], []>} : vector<8x8xf32>, vector<8x384xf32>, vector<8x384xf32> -> vector<8x384xf32>
    %35 = arith.addf %30, %34 : vector<8x384xf32>
    %c366_i32 = arith.constant 366 : i32
    %36 = tpu.dynamic_rotate %2 by %c366_i32 dim 1 : vector<8x384xf32>, i32 -> vector<8x384xf32>
    %c7 = arith.constant 7 : index
    %c0_26 = arith.constant 0 : index
    %c0_27 = arith.constant 0 : index
    %37 = vector.load %arg1[%c7, %c0_26, %c0_27] : memref<9x8x8xf32, #tpu.memory_space<vmem>>, vector<1x8x8xf32>
    %38 = vector.shape_cast %37 : vector<1x8x8xf32> to vector<8x8xf32>
    %cst_28 = arith.constant dense<0.000000e+00> : vector<8x384xf32>
    %39 = tpu.matmul %38, %36, %cst_28 {dimension_numbers = #tpu.dot_dimension_numbers<[1], [0], [0], [1], [0, 0, 1, 1], [], []>} : vector<8x8xf32>, vector<8x384xf32>, vector<8x384xf32> -> vector<8x384xf32>
    %40 = arith.addf %35, %39 : vector<8x384xf32>
    %c365_i32 = arith.constant 365 : i32
    %41 = tpu.dynamic_rotate %2 by %c365_i32 dim 1 : vector<8x384xf32>, i32 -> vector<8x384xf32>
    %c8 = arith.constant 8 : index
    %c0_29 = arith.constant 0 : index
    %c0_30 = arith.constant 0 : index
    %42 = vector.load %arg1[%c8, %c0_29, %c0_30] : memref<9x8x8xf32, #tpu.memory_space<vmem>>, vector<1x8x8xf32>
    %43 = vector.shape_cast %42 : vector<1x8x8xf32> to vector<8x8xf32>
    %cst_31 = arith.constant dense<0.000000e+00> : vector<8x384xf32>
    %44 = tpu.matmul %43, %41, %cst_31 {dimension_numbers = #tpu.dot_dimension_numbers<[1], [0], [0], [1], [0, 0, 1, 1], [], []>} : vector<8x8xf32>, vector<8x384xf32>, vector<8x384xf32> -> vector<8x384xf32>
    %45 = arith.addf %40, %44 : vector<8x384xf32>
    %c0_32 = arith.constant 0 : index
    %c0_33 = arith.constant 0 : index
    %46 = vector.load %arg2[%c0_32, %c0_33] : memref<8x1xf32, #tpu.memory_space<vmem>>, vector<8x1xf32>
    %c0_34 = arith.constant 0 : index
    %c0_35 = arith.constant 0 : index
    %47 = vector.load %arg3[%c0_34, %c0_35] : memref<8x1xf32, #tpu.memory_space<vmem>>, vector<8x1xf32>
    %cst_36 = arith.constant dense<0.000000e+00> : vector<8x1xf32>
    %48 = tpu.matmul %45, %1, %cst_36 {dimension_numbers = #tpu.dot_dimension_numbers<[1], [0], [0], [1], [0, 0, 1, 1], [], []>} : vector<8x384xf32>, vector<384x1xf32>, vector<8x1xf32> -> vector<8x1xf32>
    %49 = arith.mulf %45, %45 : vector<8x384xf32>
    %cst_37 = arith.constant dense<0.000000e+00> : vector<8x1xf32>
    %50 = tpu.matmul %49, %1, %cst_37 {dimension_numbers = #tpu.dot_dimension_numbers<[1], [0], [0], [1], [0, 0, 1, 1], [], []>} : vector<8x384xf32>, vector<384x1xf32>, vector<8x1xf32> -> vector<8x1xf32>
    %cst_38 = arith.constant 3.906250e-03 : f32
    %51 = vector.broadcast %cst_38 : f32 to vector<8x1xf32>
    %52 = arith.mulf %48, %51 : vector<8x1xf32>
    %cst_39 = arith.constant 3.906250e-03 : f32
    %53 = vector.broadcast %cst_39 : f32 to vector<8x1xf32>
    %54 = arith.mulf %50, %53 : vector<8x1xf32>
    %55 = arith.mulf %52, %52 : vector<8x1xf32>
    %56 = arith.subf %54, %55 : vector<8x1xf32>
    %cst_40 = arith.constant 0.000000e+00 : f32
    %57 = vector.broadcast %cst_40 : f32 to vector<8x1xf32>
    %58 = arith.maximumf %56, %57 : vector<8x1xf32>
    %cst_41 = arith.constant 9.99999974E-6 : f32
    %59 = vector.broadcast %cst_41 : f32 to vector<8x1xf32>
    %60 = arith.addf %58, %59 : vector<8x1xf32>
    %61 = math.rsqrt %60 : vector<8x1xf32>
    %62 = arith.mulf %46, %61 : vector<8x1xf32>
    %63 = arith.mulf %52, %62 : vector<8x1xf32>
    %64 = arith.subf %47, %63 : vector<8x1xf32>
    %65 = vector.broadcast %62 : vector<8x1xf32> to vector<8x384xf32>
    %66 = arith.mulf %45, %65 : vector<8x384xf32>
    %67 = vector.broadcast %64 : vector<8x1xf32> to vector<8x384xf32>
    %68 = arith.addf %66, %67 : vector<8x384xf32>
    %cst_42 = arith.constant 0.000000e+00 : f32
    %69 = vector.broadcast %cst_42 : f32 to vector<8x384xf32>
    %70 = arith.maximumf %68, %69 : vector<8x384xf32>
    %71 = vector.broadcast %0 : vector<1x384xf32> to vector<8x384xf32>
    %72 = arith.mulf %70, %71 : vector<8x384xf32>
    %c19_i32_43 = arith.constant 19 : i32
    %73 = tpu.dynamic_rotate %72 by %c19_i32_43 dim 1 : vector<8x384xf32>, i32 -> vector<8x384xf32>
    %c0_44 = arith.constant 0 : index
    %c0_45 = arith.constant 0 : index
    %c0_46 = arith.constant 0 : index
    %74 = vector.load %arg4[%c0_44, %c0_45, %c0_46] : memref<9x8x8xf32, #tpu.memory_space<vmem>>, vector<1x8x8xf32>
    %75 = vector.shape_cast %74 : vector<1x8x8xf32> to vector<8x8xf32>
    %cst_47 = arith.constant dense<0.000000e+00> : vector<8x384xf32>
    %76 = tpu.matmul %75, %73, %cst_47 {dimension_numbers = #tpu.dot_dimension_numbers<[1], [0], [0], [1], [0, 0, 1, 1], [], []>} : vector<8x8xf32>, vector<8x384xf32>, vector<8x384xf32> -> vector<8x384xf32>
    %c18_i32_48 = arith.constant 18 : i32
    %77 = tpu.dynamic_rotate %72 by %c18_i32_48 dim 1 : vector<8x384xf32>, i32 -> vector<8x384xf32>
    %c1_49 = arith.constant 1 : index
    %c0_50 = arith.constant 0 : index
    %c0_51 = arith.constant 0 : index
    %78 = vector.load %arg4[%c1_49, %c0_50, %c0_51] : memref<9x8x8xf32, #tpu.memory_space<vmem>>, vector<1x8x8xf32>
    %79 = vector.shape_cast %78 : vector<1x8x8xf32> to vector<8x8xf32>
    %cst_52 = arith.constant dense<0.000000e+00> : vector<8x384xf32>
    %80 = tpu.matmul %79, %77, %cst_52 {dimension_numbers = #tpu.dot_dimension_numbers<[1], [0], [0], [1], [0, 0, 1, 1], [], []>} : vector<8x8xf32>, vector<8x384xf32>, vector<8x384xf32> -> vector<8x384xf32>
    %81 = arith.addf %76, %80 : vector<8x384xf32>
    %c17_i32_53 = arith.constant 17 : i32
    %82 = tpu.dynamic_rotate %72 by %c17_i32_53 dim 1 : vector<8x384xf32>, i32 -> vector<8x384xf32>
    %c2_54 = arith.constant 2 : index
    %c0_55 = arith.constant 0 : index
    %c0_56 = arith.constant 0 : index
    %83 = vector.load %arg4[%c2_54, %c0_55, %c0_56] : memref<9x8x8xf32, #tpu.memory_space<vmem>>, vector<1x8x8xf32>
    %84 = vector.shape_cast %83 : vector<1x8x8xf32> to vector<8x8xf32>
    %cst_57 = arith.constant dense<0.000000e+00> : vector<8x384xf32>
    %85 = tpu.matmul %84, %82, %cst_57 {dimension_numbers = #tpu.dot_dimension_numbers<[1], [0], [0], [1], [0, 0, 1, 1], [], []>} : vector<8x8xf32>, vector<8x384xf32>, vector<8x384xf32> -> vector<8x384xf32>
    %86 = arith.addf %81, %85 : vector<8x384xf32>
    %c1_i32_58 = arith.constant 1 : i32
    %87 = tpu.dynamic_rotate %72 by %c1_i32_58 dim 1 : vector<8x384xf32>, i32 -> vector<8x384xf32>
    %c3_59 = arith.constant 3 : index
    %c0_60 = arith.constant 0 : index
    %c0_61 = arith.constant 0 : index
    %88 = vector.load %arg4[%c3_59, %c0_60, %c0_61] : memref<9x8x8xf32, #tpu.memory_space<vmem>>, vector<1x8x8xf32>
    %89 = vector.shape_cast %88 : vector<1x8x8xf32> to vector<8x8xf32>
    %cst_62 = arith.constant dense<0.000000e+00> : vector<8x384xf32>
    %90 = tpu.matmul %89, %87, %cst_62 {dimension_numbers = #tpu.dot_dimension_numbers<[1], [0], [0], [1], [0, 0, 1, 1], [], []>} : vector<8x8xf32>, vector<8x384xf32>, vector<8x384xf32> -> vector<8x384xf32>
    %91 = arith.addf %86, %90 : vector<8x384xf32>
    %c4_63 = arith.constant 4 : index
    %c0_64 = arith.constant 0 : index
    %c0_65 = arith.constant 0 : index
    %92 = vector.load %arg4[%c4_63, %c0_64, %c0_65] : memref<9x8x8xf32, #tpu.memory_space<vmem>>, vector<1x8x8xf32>
    %93 = vector.shape_cast %92 : vector<1x8x8xf32> to vector<8x8xf32>
    %cst_66 = arith.constant dense<0.000000e+00> : vector<8x384xf32>
    %94 = tpu.matmul %93, %72, %cst_66 {dimension_numbers = #tpu.dot_dimension_numbers<[1], [0], [0], [1], [0, 0, 1, 1], [], []>} : vector<8x8xf32>, vector<8x384xf32>, vector<8x384xf32> -> vector<8x384xf32>
    %95 = arith.addf %91, %94 : vector<8x384xf32>
    %c383_i32_67 = arith.constant 383 : i32
    %96 = tpu.dynamic_rotate %72 by %c383_i32_67 dim 1 : vector<8x384xf32>, i32 -> vector<8x384xf32>
    %c5_68 = arith.constant 5 : index
    %c0_69 = arith.constant 0 : index
    %c0_70 = arith.constant 0 : index
    %97 = vector.load %arg4[%c5_68, %c0_69, %c0_70] : memref<9x8x8xf32, #tpu.memory_space<vmem>>, vector<1x8x8xf32>
    %98 = vector.shape_cast %97 : vector<1x8x8xf32> to vector<8x8xf32>
    %cst_71 = arith.constant dense<0.000000e+00> : vector<8x384xf32>
    %99 = tpu.matmul %98, %96, %cst_71 {dimension_numbers = #tpu.dot_dimension_numbers<[1], [0], [0], [1], [0, 0, 1, 1], [], []>} : vector<8x8xf32>, vector<8x384xf32>, vector<8x384xf32> -> vector<8x384xf32>
    %100 = arith.addf %95, %99 : vector<8x384xf32>
    %c367_i32_72 = arith.constant 367 : i32
    %101 = tpu.dynamic_rotate %72 by %c367_i32_72 dim 1 : vector<8x384xf32>, i32 -> vector<8x384xf32>
    %c6_73 = arith.constant 6 : index
    %c0_74 = arith.constant 0 : index
    %c0_75 = arith.constant 0 : index
    %102 = vector.load %arg4[%c6_73, %c0_74, %c0_75] : memref<9x8x8xf32, #tpu.memory_space<vmem>>, vector<1x8x8xf32>
    %103 = vector.shape_cast %102 : vector<1x8x8xf32> to vector<8x8xf32>
    %cst_76 = arith.constant dense<0.000000e+00> : vector<8x384xf32>
    %104 = tpu.matmul %103, %101, %cst_76 {dimension_numbers = #tpu.dot_dimension_numbers<[1], [0], [0], [1], [0, 0, 1, 1], [], []>} : vector<8x8xf32>, vector<8x384xf32>, vector<8x384xf32> -> vector<8x384xf32>
    %105 = arith.addf %100, %104 : vector<8x384xf32>
    %c366_i32_77 = arith.constant 366 : i32
    %106 = tpu.dynamic_rotate %72 by %c366_i32_77 dim 1 : vector<8x384xf32>, i32 -> vector<8x384xf32>
    %c7_78 = arith.constant 7 : index
    %c0_79 = arith.constant 0 : index
    %c0_80 = arith.constant 0 : index
    %107 = vector.load %arg4[%c7_78, %c0_79, %c0_80] : memref<9x8x8xf32, #tpu.memory_space<vmem>>, vector<1x8x8xf32>
    %108 = vector.shape_cast %107 : vector<1x8x8xf32> to vector<8x8xf32>
    %cst_81 = arith.constant dense<0.000000e+00> : vector<8x384xf32>
    %109 = tpu.matmul %108, %106, %cst_81 {dimension_numbers = #tpu.dot_dimension_numbers<[1], [0], [0], [1], [0, 0, 1, 1], [], []>} : vector<8x8xf32>, vector<8x384xf32>, vector<8x384xf32> -> vector<8x384xf32>
    %110 = arith.addf %105, %109 : vector<8x384xf32>
    %c365_i32_82 = arith.constant 365 : i32
    %111 = tpu.dynamic_rotate %72 by %c365_i32_82 dim 1 : vector<8x384xf32>, i32 -> vector<8x384xf32>
    %c8_83 = arith.constant 8 : index
    %c0_84 = arith.constant 0 : index
    %c0_85 = arith.constant 0 : index
    %112 = vector.load %arg4[%c8_83, %c0_84, %c0_85] : memref<9x8x8xf32, #tpu.memory_space<vmem>>, vector<1x8x8xf32>
    %113 = vector.shape_cast %112 : vector<1x8x8xf32> to vector<8x8xf32>
    %cst_86 = arith.constant dense<0.000000e+00> : vector<8x384xf32>
    %114 = tpu.matmul %113, %111, %cst_86 {dimension_numbers = #tpu.dot_dimension_numbers<[1], [0], [0], [1], [0, 0, 1, 1], [], []>} : vector<8x8xf32>, vector<8x384xf32>, vector<8x384xf32> -> vector<8x384xf32>
    %115 = arith.addf %110, %114 : vector<8x384xf32>
    %c0_87 = arith.constant 0 : index
    %c0_88 = arith.constant 0 : index
    %116 = vector.load %arg5[%c0_87, %c0_88] : memref<8x1xf32, #tpu.memory_space<vmem>>, vector<8x1xf32>
    %c0_89 = arith.constant 0 : index
    %c0_90 = arith.constant 0 : index
    %117 = vector.load %arg6[%c0_89, %c0_90] : memref<8x1xf32, #tpu.memory_space<vmem>>, vector<8x1xf32>
    %cst_91 = arith.constant dense<0.000000e+00> : vector<8x1xf32>
    %118 = tpu.matmul %115, %1, %cst_91 {dimension_numbers = #tpu.dot_dimension_numbers<[1], [0], [0], [1], [0, 0, 1, 1], [], []>} : vector<8x384xf32>, vector<384x1xf32>, vector<8x1xf32> -> vector<8x1xf32>
    %119 = arith.mulf %115, %115 : vector<8x384xf32>
    %cst_92 = arith.constant dense<0.000000e+00> : vector<8x1xf32>
    %120 = tpu.matmul %119, %1, %cst_92 {dimension_numbers = #tpu.dot_dimension_numbers<[1], [0], [0], [1], [0, 0, 1, 1], [], []>} : vector<8x384xf32>, vector<384x1xf32>, vector<8x1xf32> -> vector<8x1xf32>
    %cst_93 = arith.constant 3.906250e-03 : f32
    %121 = vector.broadcast %cst_93 : f32 to vector<8x1xf32>
    %122 = arith.mulf %118, %121 : vector<8x1xf32>
    %cst_94 = arith.constant 3.906250e-03 : f32
    %123 = vector.broadcast %cst_94 : f32 to vector<8x1xf32>
    %124 = arith.mulf %120, %123 : vector<8x1xf32>
    %125 = arith.mulf %122, %122 : vector<8x1xf32>
    %126 = arith.subf %124, %125 : vector<8x1xf32>
    %cst_95 = arith.constant 0.000000e+00 : f32
    %127 = vector.broadcast %cst_95 : f32 to vector<8x1xf32>
    %128 = arith.maximumf %126, %127 : vector<8x1xf32>
    %cst_96 = arith.constant 9.99999974E-6 : f32
    %129 = vector.broadcast %cst_96 : f32 to vector<8x1xf32>
    %130 = arith.addf %128, %129 : vector<8x1xf32>
    %131 = math.rsqrt %130 : vector<8x1xf32>
    %132 = arith.mulf %116, %131 : vector<8x1xf32>
    %133 = arith.mulf %122, %132 : vector<8x1xf32>
    %134 = arith.subf %117, %133 : vector<8x1xf32>
    %135 = vector.broadcast %132 : vector<8x1xf32> to vector<8x384xf32>
    %136 = arith.mulf %115, %135 : vector<8x384xf32>
    %137 = vector.broadcast %134 : vector<8x1xf32> to vector<8x384xf32>
    %138 = arith.addf %136, %137 : vector<8x384xf32>
    %cst_97 = arith.constant 0.000000e+00 : f32
    %139 = vector.broadcast %cst_97 : f32 to vector<8x384xf32>
    %140 = arith.maximumf %138, %139 : vector<8x384xf32>
    %141 = vector.broadcast %0 : vector<1x384xf32> to vector<8x384xf32>
    %142 = arith.mulf %140, %141 : vector<8x384xf32>
    %c0_98 = arith.constant 0 : index
    %c0_99 = arith.constant 0 : index
    %143 = vector.load %arg9[%c0_98, %c0_99] : memref<8x384xf32, #tpu.memory_space<vmem>>, vector<8x384xf32>
    tpu.vector_store %arg9[%c0_98, %c0_99], %142 {strides = array<i32>} : memref<8x384xf32, #tpu.memory_space<vmem>>, vector<8x384xf32>,
    return
  }
}

</mosaic_0001>

<bundles_post_ra>
// kernel: tpu_custom_call.1
= control target key start
LH: loop header
LB: loop body
LE: loop exit
PB: predicated region body
PF: predicated region fallthrough
CT: control target
= control target key end

     0   :  { %s4188_s13 = smov 18   ;;  %v5318_v3 = vmov 0.0   ;;  %s5307_s0 = inlined_call_operand.vmem [shape: f32[8,384], index: 0, kind: input, shape index: {}]   ;;  %s5308_s1 = inlined_call_operand.vmem [shape: f32[9,8,8], index: 1, kind: input, shape index: {}]   ;;  %s5309_s2 = inlined_call_operand.vmem [shape: f32[8,1], index: 2, kind: input, shape index: {}]   ;;  %s5310_s3 = inlined_call_operand.vmem [shape: f32[8,1], index: 3, kind: input, shape index: {}]   ;;  %s5311_s4 = inlined_call_operand.vmem [shape: f32[9,8,8], index: 4, kind: input, shape index: {}]   ;;  %s5312_s5 = inlined_call_operand.vmem [shape: f32[8,1], index: 5, kind: input, shape index: {}]   ;;  %s5313_s6 = inlined_call_operand.vmem [shape: f32[8,1], index: 6, kind: input, shape index: {}]   ;;  %s5314_s7 = inlined_call_operand.vmem [shape: f32[1,384], index: 7, kind: input, shape index: {}]   ;;  %s5315_s8 = inlined_call_operand.vmem [shape: f32[384,1], index: 8, kind: input, shape index: {}]   ;;  %s5316_s9 = inlined_call_operand.hbm [shape: f32[8,384], index: 9, kind: output, shape index: {}]  }
   0x1   :  { %v4253_v0 = vld [vmem:[%s5307_s0 + $0x10] sm:$0xff]  ;;  %v4258_v1 = vld [vmem:[%s5307_s0] sm:$0xff]  ;;  %v4267_v2 = vld [vmem:[%s5307_s0 + $0x8] sm:$0xff]  ;;  %3871 = vmatprep.subr.mxu1 %v5318_v3  ;;  %178 = vmatprep.mubr.f32.mxu0 %v5318_v3 }
   0x2   :  { %102 = vrot.lane.b32.xlu1 %v4253_v0, %s4188_s13  ;;  %98 = vrot.lane.b32.xlu0 %v4258_v1, %s4188_s13 }
   0x3   :  { %14 = vsyncpa [#allocation3], 0  ;;  %vm4190_vm0 = vmmov 0   ;;  %s4191_s16 = smov 19   ;;  %s4192_s0 = smov 17   ;;  %v5317_v4 = vlaneseq  ;;  %v3575_v12 = vld [vmem:[%s5308_s1 + $0x8] sm:$0xff] }
   0x4   :  { %3873 = vmatprep.mubr.msk.f32.mxu1 %vm4190_vm0, %v5318_v3  ;;  %s4193_s17 = smov 1   ;;  %s4194_s18 = smov 127   ;;  %vm110_vm2 = vcmask 64512   ;;  %v97_v19 = vld [vmem:[%s5308_s1] sm:$0xff]  ;;  %v3580_v25 = vld [vmem:[%s5308_s1 + $0x10] sm:$0xff]  ;;  %v3583_v30 = vld [vmem:[%s5308_s1 + $0x18] sm:$0xff] }
   0x5   :  { %s4195_s19 = smov 111   ;;  %s4196_s20 = smov 110   ;;  %v4318_v5 = vand.u32 127, %v5317_v4  ;;  %v3586_v37 = vld [vmem:[%s5308_s1 + $0x20] sm:$0xff]  ;;  %v3589_v42 = vld [vmem:[%s5308_s1 + $0x28] sm:$0xff]  ;;  %v3592_v48 = vld [vmem:[%s5308_s1 + $0x30] sm:$0xff] }
   0x6   :  { %85 = vrot.lane.b32.xlu1 %v4258_v1, %s4191_s16  ;;  %100 = vrot.lane.b32.xlu0 %v4267_v2, %s4188_s13  ;;  %s4197_s21 = smov 109   ;;  %v3595_v54 = vld [vmem:[%s5308_s1 + $0x38] sm:$0xff]  ;;  %v3598_v59 = vld [vmem:[%s5308_s1 + $0x40] sm:$0xff] }
   0x7   :  { %5360 = vst [vmem:[#allocation5_spill] sm:$0xff] %v4318_v5  ;;  %vm104_vm1 = vcmp.lt.s32.totalorder %v4318_v5, 18  ;;  %vm93_vm3 = vcmp.lt.s32.totalorder %v4318_v5, 19  ;;  %vm405_vm4 = vcmp.lt.s32.totalorder %v4318_v5, 17  ;;  %vm564_vm5 = vcmp.lt.s32.totalorder %v4318_v5, 1  ;;  %v4462_v63 = vld [vmem:[%s5315_s8 + $0x178] sm:$0xff] }
   0x8   :  { %vm872_vm6 = vcmp.lt.s32.totalorder %v4318_v5, 127  ;;  %vm1031_vm7 = vcmp.lt.s32.totalorder %v4318_v5, 111  ;;  %vm1190_vm8 = vcmp.lt.s32.totalorder %v4318_v5, 110  ;;  %vm1349_vm9 = vcmp.lt.s32.totalorder %v4318_v5, 109 }
   0xa   :  { %89 = vrot.lane.b32.xlu1 %v4253_v0, %s4191_s16  ;;  %87 = vrot.lane.b32.xlu0 %v4267_v2, %s4191_s16 }
   0xe   :  { %401 = vrot.lane.b32.xlu1 %v4267_v2, %s4192_s0  ;;  %399 = vrot.lane.b32.xlu0 %v4258_v1, %s4192_s0 }
  0x12   :  { %558 = vrot.lane.b32.xlu1 %v4258_v1, %s4193_s17  ;;  %403 = vrot.lane.b32.xlu0 %v4253_v0, %s4192_s0 }
  0x16   :  { %562 = vrot.lane.b32.xlu1 %v4253_v0, %s4193_s17  ;;  %560 = vrot.lane.b32.xlu0 %v4267_v2, %s4193_s17 }
  0x1a   :  { %870 = vrot.lane.b32.xlu1 %v4253_v0, %s4194_s18  ;;  %868 = vrot.lane.b32.xlu0 %v4267_v2, %s4194_s18 }
  0x1e   :  { %1027 = vrot.lane.b32.xlu1 %v4267_v2, %s4195_s19  ;;  %866 = vrot.lane.b32.xlu0 %v4258_v1, %s4194_s18 }
  0x22   :  { %1025 = vrot.lane.b32.xlu1 %v4258_v1, %s4195_s19  ;;  %1029 = vrot.lane.b32.xlu0 %v4253_v0, %s4195_s19 }
  0x26   :  { %1188 = vrot.lane.b32.xlu1 %v4253_v0, %s4196_s20  ;;  %1186 = vrot.lane.b32.xlu0 %v4267_v2, %s4196_s20 }
  0x2a   :  { %1345 = vrot.lane.b32.xlu1 %v4267_v2, %s4197_s21  ;;  %1184 = vrot.lane.b32.xlu0 %v4258_v1, %s4196_s20 }
  0x2e   :  { %1343 = vrot.lane.b32.xlu1 %v4258_v1, %s4197_s21  ;;  %1347 = vrot.lane.b32.xlu0 %v4253_v0, %s4197_s21 }
  0x74   :  { %v103_v6 = vpop.permute.xlu1 %102  ;;  %v99_v7 = vpop.permute.xlu0 %98 }
  0x75   :  { %v107_v13 = vsel %vm104_vm1, %v103_v6, %v99_v7 }
  0x78   :  { %v86_v8 = vpop.permute.xlu1 %85  ;;  %v101_v9 = vpop.permute.xlu0 %100 }
  0x79   :  { %v106_v10 = vsel %vm104_vm1, %v99_v7, %v101_v9  ;;  %v105_v11 = vsel %vm104_vm1, %v101_v9, %v103_v6  ;;  %v4487_v6 = vld [vmem:[%s5315_s8 + $0x168] sm:$0xff]  ;;  %v4494_v7 = vld [vmem:[%s5315_s8 + $0xf0] sm:$0xff]  ;;  %v4506_v9 = vld [vmem:[%s5315_s8 + $0x160] sm:$0xff] }
  0x7a   :  { %144 = vmatprep.subr.mxu0 %v106_v10  ;;  %3872 = vmatpush3.msra.mxu1 %v105_v11  ;;  %v4513_v10 = vld [vmem:[%s5315_s8 + $0xe8] sm:$0xff] }
  0x7b   :  { %145 = vmatpush1.msra.mxu0 %v107_v13  ;;  %3876 = vmatprep.subr.mxu1 %v5318_v3  ;;  %v4520_v11 = vld [vmem:[%s5315_s8 + $0x68] sm:$0xff]  ;;  %v4532_v13 = vld [vmem:[%s5315_s8 + $0xe0] sm:$0xff] }
  0x7c   :  { %v90_v14 = vpop.permute.xlu1 %89  ;;  %v88_v15 = vpop.permute.xlu0 %87  ;;  %3576 = vmatmul.mubr.msk.f32.vlgmr.msra.gmra.mxu0 %vm110_vm2, %v3575_v12  ;;  %3874 = vmatmul.mubr.msk.f32.vlgmr.msra.gmra.mxu1 %vm110_vm2, %v3575_v12  ;;  %v4525_v12 = vld [vmem:[%s5315_s8 + $0x158] sm:$0xff] }
  0x7d   :  { %v96_v16 = vsel %vm93_vm3, %v90_v14, %v86_v8  ;;  %v94_v17 = vsel %vm93_vm3, %v88_v15, %v90_v14  ;;  %v95_v18 = vsel %vm93_vm3, %v86_v8, %v88_v15  ;;  %322 = vmatprep.mubr.f32.mxu0 %v5318_v3  ;;  %3878 = vmatprep.mubr.msk.f32.mxu1 %vm4190_vm0, %v5318_v3  ;;  %v4501_v8 = vld [vmem:[%s5315_s8 + $0x70] sm:$0xff]  ;;  %v4539_v14 = vld [vmem:[%s5315_s8 + $0x60] sm:$0xff] }
  0x7e   :  { %288 = vmatprep.subr.mxu0 %v95_v18  ;;  %3877 = vmatpush3.msra.mxu1 %v94_v17  ;;  %v4544_v15 = vld [vmem:[%s5315_s8 + $0x150] sm:$0xff]  ;;  %v4558_v17 = vld [vmem:[%s5315_s8 + $0x58] sm:$0xff]  ;;  %v4563_v18 = vld [vmem:[%s5315_s8 + $0x148] sm:$0xff] }
  0x7f   :  { %289 = vmatpush1.msra.mxu0 %v96_v16  ;;  %3881 = vmatprep.subr.mxu1 %v5318_v3  ;;  %v4551_v16 = vld [vmem:[%s5315_s8 + $0xd8] sm:$0xff] }
  0x80   :  { %v402_v20 = vpop.permute.xlu1 %401  ;;  %v400_v21 = vpop.permute.xlu0 %399  ;;  %3578 = vmatmul.mubr.msk.f32.vlgmr.msra.gmra.mxu0 %vm110_vm2, %v97_v19  ;;  %3879 = vmatmul.mubr.msk.f32.vlgmr.msra.gmra.mxu1 %vm110_vm2, %v97_v19  ;;  %v4570_v19 = vld [vmem:[%s5315_s8 + $0xd0] sm:$0xff] }
  0x81   :  { %v407_v22 = vsel %vm405_vm4, %v400_v21, %v402_v20  ;;  %478 = vmatprep.mubr.f32.mxu0 %v5318_v3  ;;  %3883 = vmatprep.mubr.msk.f32.mxu1 %vm4190_vm0, %v5318_v3 }
  0x82   :  { %444 = vmatprep.subr.mxu0 %v407_v22  ;;  %v4589_v22 = vld [vmem:[%s5315_s8 + $0xc8] sm:$0xff] }
  0x84   :  { %v559_v23 = vpop.permute.xlu1 %558  ;;  %v404_v24 = vpop.permute.xlu0 %403 }
  0x85   :  { %v406_v26 = vsel %vm405_vm4, %v402_v20, %v404_v24  ;;  %v408_v27 = vsel %vm405_vm4, %v404_v24, %v400_v21  ;;  %v4577_v20 = vld [vmem:[%s5315_s8 + $0x50] sm:$0xff]  ;;  %v4582_v21 = vld [vmem:[%s5315_s8 + $0x140] sm:$0xff]  ;;  %v4601_v24 = vld [vmem:[%s5315_s8 + $0x138] sm:$0xff] }
  0x86   :  { %445 = vmatpush1.msra.mxu0 %v408_v27  ;;  %3882 = vmatpush3.msra.mxu1 %v406_v26  ;;  %v4615_v26 = vld [vmem:[%s5315_s8 + $0x40] sm:$0xff]  ;;  %v4620_v27 = vld [vmem:[%s5315_s8 + $0x130] sm:$0xff] }
  0x87   :  { %3581 = vmatmul.mubr.msk.f32.vlgmr.msra.gmra.mxu0 %vm110_vm2, %v3580_v25  ;;  %3884 = vmatmul.mubr.msk.f32.vlgmr.msra.gmra.mxu1 %vm110_vm2, %v3580_v25  ;;  %v4608_v25 = vld [vmem:[%s5315_s8 + $0xc0] sm:$0xff] }
  0x88   :  { %v563_v28 = vpop.permute.xlu1 %562  ;;  %v561_v29 = vpop.permute.xlu0 %560  ;;  %3886 = vmatprep.subr.mxu1 %v5318_v3  ;;  %3888 = vmatprep.mubr.msk.f32.mxu1 %vm4190_vm0, %v5318_v3 }
  0x89   :  { %v567_v31 = vsel %vm564_vm5, %v563_v28, %v559_v23  ;;  %v565_v32 = vsel %vm564_vm5, %v561_v29, %v563_v28  ;;  %v566_v33 = vsel %vm564_vm5, %v559_v23, %v561_v29  ;;  %637 = vmatprep.mubr.f32.mxu0 %v5318_v3  ;;  %v4596_v23 = vld [vmem:[%s5315_s8 + $0x48] sm:$0xff]  ;;  %v4627_v28 = vld [vmem:[%s5315_s8 + $0xb8] sm:$0xff] }
  0x8a   :  { %603 = vmatprep.subr.mxu0 %v566_v33  ;;  %3887 = vmatpush3.msra.mxu1 %v565_v32  ;;  %v4634_v29 = vld [vmem:[%s5315_s8 + $0x38] sm:$0xff]  ;;  %v4651_v32 = vld [vmem:[%s5315_s8 + $0x30] sm:$0xff]  ;;  %v4656_v33 = vld [vmem:[%s5315_s8 + $0x120] sm:$0xff] }
  0x8b   :  { %604 = vmatpush1.msra.mxu0 %v567_v31  ;;  %3889 = vmatmul.mubr.msk.f32.vlgmr.msra.gmra.mxu1 %vm110_vm2, %v3583_v30  ;;  %v4646_v31 = vld [vmem:[%s5315_s8 + $0xb0] sm:$0xff]  ;;  %5362 = vst [vmem:[#allocation7_spill] sm:$0xff] %v4651_v32  ;;  %5363 = vst [vmem:[#allocation8_spill] sm:$0xff] %v4656_v33 }
  0x8c   :  { %v871_v34 = vpop.permute.xlu1 %870  ;;  %3584 = vmatmul.mubr.msk.f32.vlgmr.msra.gmra.mxu0 %vm110_vm2, %v3583_v30  ;;  %752 = vmatprep.subr.mxu0 %v4267_v2  ;;  %v869_v35 = vpop.permute.xlu0 %868  ;;  %v4482_v2 = vld [vmem:[%s5315_s8 + $0x78] sm:$0xff]  ;;  %v4639_v30 = vld [vmem:[%s5315_s8 + $0x128] sm:$0xff] }
  0x8d   :  { %753 = vmatpush1.msra.mxu0 %v4258_v1  ;;  %3891 = vmatprep.subr.mxu1 %v5318_v3  ;;  %v873_v36 = vsel %vm872_vm6, %v869_v35, %v871_v34  ;;  %v4475_v1 = vld [vmem:[%s5315_s8 + $0xf8] sm:$0xff] }
  0x8e   :  { %3892 = vmatpush3.msra.mxu1 %v4253_v0  ;;  %3893 = vmatprep.mubr.msk.f32.mxu1 %vm4190_vm0, %v5318_v3  ;;  %v4469_v0 = vld [vmem:[%s5315_s8 + $0x170] sm:$0xff]  ;;  %5361 = vst [vmem:[#allocation6_spill] sm:$0xff] %v4475_v1 }
  0x8f   :  { %911 = vmatprep.subr.mxu0 %v873_v36  ;;  %786 = vmatprep.mubr.f32.mxu0 %v5318_v3  ;;  %v4673_v36 = vld [vmem:[%s5315_s8 + $0x118] sm:$0xff] }
  0x90   :  { %3894 = vmatmul.mubr.msk.f32.vlgmr.msra.gmra.mxu1 %vm110_vm2, %v3586_v37  ;;  %v1028_v38 = vpop.permute.xlu1 %1027  ;;  %3587 = vmatmul.mubr.msk.f32.vlgmr.msra.gmra.mxu0 %vm110_vm2, %v3586_v37  ;;  %v867_v39 = vpop.permute.xlu0 %866  ;;  %5366 = vst [vmem:[#allocation11_spill] sm:$0xff] %v4673_v36  ;;  %v4684_v37 = vld [vmem:[%s5315_s8 + $0xa0] sm:$0xff] }
  0x91   :  { %v874_v40 = vsel %vm872_vm6, %v867_v39, %v869_v35  ;;  %v875_v41 = vsel %vm872_vm6, %v871_v34, %v867_v39  ;;  %3896 = vmatprep.subr.mxu1 %v5318_v3  ;;  %3898 = vmatprep.mubr.msk.f32.mxu1 %vm4190_vm0, %v5318_v3  ;;  %v4663_v34 = vld [vmem:[%s5315_s8 + $0xa8] sm:$0xff]  ;;  %5367 = vst [vmem:[#allocation12_spill] sm:$0xff] %v4684_v37  ;;  %v4696_v39 = vld [vmem:[%s5315_s8 + $0x110] sm:$0xff] }
  0x92   :  { %912 = vmatpush1.msra.mxu0 %v874_v40  ;;  %3897 = vmatpush3.msra.mxu1 %v875_v41  ;;  %5364 = vst [vmem:[#allocation9_spill] sm:$0xff] %v4663_v34  ;;  %v4668_v35 = vld [vmem:[%s5315_s8 + $0x28] sm:$0xff]  ;;  %5369 = vst [vmem:[#allocation14_spill] sm:$0xff] %v4696_v39  ;;  %v4703_v40 = vld [vmem:[%s5315_s8 + $0x98] sm:$0xff] }
  0x93   :  { %945 = vmatprep.mubr.f32.mxu0 %v5318_v3  ;;  %3901 = vmatprep.subr.mxu1 %v5318_v3  ;;  %5365 = vst [vmem:[#allocation10_spill] sm:$0xff] %v4668_v35  ;;  %5370 = vst [vmem:[#allocation15_spill] sm:$0xff] %v4703_v40  ;;  %v4710_v41 = vld [vmem:[%s5315_s8 + $0x18] sm:$0xff] }
  0x94   :  { %3899 = vmatmul.mubr.msk.f32.vlgmr.msra.gmra.mxu1 %vm110_vm2, %v3589_v42  ;;  %v1026_v43 = vpop.permute.xlu1 %1025  ;;  %3590 = vmatmul.mubr.msk.f32.vlgmr.msra.gmra.mxu0 %vm110_vm2, %v3589_v42  ;;  %v1030_v44 = vpop.permute.xlu0 %1029  ;;  %5371 = vst [vmem:[#allocation16_spill] sm:$0xff] %v4710_v41  ;;  %v4715_v42 = vld [vmem:[%s5315_s8 + $0x108] sm:$0xff] }
  0x95   :  { %v1033_v45 = vsel %vm1031_vm7, %v1026_v43, %v1028_v38  ;;  %v1034_v46 = vsel %vm1031_vm7, %v1030_v44, %v1026_v43  ;;  %v1032_v47 = vsel %vm1031_vm7, %v1028_v38, %v1030_v44  ;;  %3903 = vmatprep.mubr.msk.f32.mxu1 %vm4190_vm0, %v5318_v3  ;;  %1104 = vmatprep.mubr.f32.mxu0 %v5318_v3  ;;  %v4691_v38 = vld [vmem:[%s5315_s8 + $0x20] sm:$0xff]  ;;  %v4722_v43 = vld [vmem:[%s5315_s8 + $0x90] sm:$0xff] }
  0x96   :  { %1070 = vmatprep.subr.mxu0 %v1032_v47  ;;  %3902 = vmatpush3.msra.mxu1 %v1034_v46  ;;  %5368 = vst [vmem:[#allocation13_spill] sm:$0xff] %v4691_v38  ;;  %5372 = vst [vmem:[#allocation17_spill] sm:$0xff] %v4715_v42  ;;  %v4729_v44 = vld [vmem:[%s5315_s8 + $0x10] sm:$0xff]  ;;  %v4741_v46 = vld [vmem:[%s5315_s8 + $0x88] sm:$0xff] }
  0x97   :  { %1071 = vmatpush1.msra.mxu0 %v1033_v45  ;;  %3906 = vmatprep.subr.mxu1 %v5318_v3  ;;  %5373 = vst [vmem:[#allocation18_spill] sm:$0xff] %v4722_v43  ;;  %5374 = vst [vmem:[#allocation19_spill] sm:$0xff] %v4729_v44  ;;  %v4734_v45 = vld [vmem:[%s5315_s8 + $0x100] sm:$0xff]  ;;  %v4748_v47 = vld [vmem:[%s5315_s8 + $0x8] sm:$0xff] }
  0x98   :  { %3904 = vmatmul.mubr.msk.f32.vlgmr.msra.gmra.mxu1 %vm110_vm2, %v3592_v48  ;;  %v1189_v49 = vpop.permute.xlu1 %1188  ;;  %3593 = vmatmul.mubr.msk.f32.vlgmr.msra.gmra.mxu0 %vm110_vm2, %v3592_v48  ;;  %v1187_v50 = vpop.permute.xlu0 %1186  ;;  %5375 = vst [vmem:[#allocation20_spill] sm:$0xff] %v4734_v45  ;;  %5376 = vst [vmem:[#allocation21_spill] sm:$0xff] %v4741_v46  ;;  %v4754_v48 = vld [vmem:[%s5315_s8 + $0x80] sm:$0xff] }
  0x99   :  { %v1191_v51 = vsel %vm1190_vm8, %v1187_v50, %v1189_v49  ;;  %1263 = vmatprep.mubr.f32.mxu0 %v5318_v3  ;;  %3908 = vmatprep.mubr.msk.f32.mxu1 %vm4190_vm0, %v5318_v3  ;;  %5377 = vst [vmem:[#allocation22_spill] sm:$0xff] %v4748_v47  ;;  %5378 = vst [vmem:[#allocation23_spill] sm:$0xff] %v4754_v48 }
  0x9a   :  { %1229 = vmatprep.subr.mxu0 %v1191_v51 }
  0x9c   :  { %v1346_v52 = vpop.permute.xlu1 %1345  ;;  %v1185_v53 = vpop.permute.xlu0 %1184 }
  0x9d   :  { %v1192_v55 = vsel %vm1190_vm8, %v1185_v53, %v1187_v50  ;;  %v1193_v56 = vsel %vm1190_vm8, %v1189_v49, %v1185_v53  ;;  %v4760_v49 = vld [vmem:[%s5315_s8] sm:$0xff] }
  0x9e   :  { %1230 = vmatpush1.msra.mxu0 %v1192_v55  ;;  %3907 = vmatpush3.msra.mxu1 %v1193_v56  ;;  %5379 = vst [vmem:[#allocation24_spill] sm:$0xff] %v4760_v49 }
  0x9f   :  { %3596 = vmatmul.mubr.msk.f32.vlgmr.msra.gmra.mxu0 %vm110_vm2, %v3595_v54  ;;  %3909 = vmatmul.mubr.msk.f32.vlgmr.msra.gmra.mxu1 %vm110_vm2, %v3595_v54 }
  0xa0   :  { %v1344_v57 = vpop.permute.xlu1 %1343  ;;  %v1348_v58 = vpop.permute.xlu0 %1347  ;;  %3911 = vmatprep.subr.mxu1 %v5318_v3  ;;  %3913 = vmatprep.mubr.msk.f32.mxu1 %vm4190_vm0, %v5318_v3 }
  0xa1   :  { %v1351_v60 = vsel %vm1349_vm9, %v1344_v57, %v1346_v52  ;;  %v1352_v61 = vsel %vm1349_vm9, %v1348_v58, %v1344_v57  ;;  %v1350_v62 = vsel %vm1349_vm9, %v1346_v52, %v1348_v58  ;;  %1422 = vmatprep.mubr.f32.mxu0 %v5318_v3 }
  0xa2   :  { %1388 = vmatprep.subr.mxu0 %v1350_v62  ;;  %3912 = vmatpush3.msra.mxu1 %v1352_v61 }
  0xa3   :  { %1389 = vmatpush1.msra.mxu0 %v1351_v60  ;;  %3914 = vmatmul.mubr.msk.f32.vlgmr.msra.gmra.mxu1 %vm110_vm2, %v3598_v59 }
  0xa4   :  { %3599 = vmatmul.mubr.msk.f32.vlgmr.msra.gmra.mxu0 %vm110_vm2, %v3598_v59  ;;  %3916 = vmatprep.subr.mxu1 %v5318_v3 }
  0xa5   :  { %3948 = vmatprep.mubr.msk.f32.mxu1 %vm4190_vm0, %v5318_v3  ;;  %3917 = vmatpush3.msra.mxu1 %v4462_v63 }
  0xa6   :  { %3918 = vmatprep.subr.mxu1 %v5318_v3  ;;  %3645 = vmatprep.subr.mxu0 %v4475_v1 }
  0xa7   :  { %3919 = vmatpush3.msra.mxu1 %v4469_v0  ;;  %3646 = vmatpush3.msra.mxu0 %v4482_v2 }
  0xa8   :  { %3920 = vmatprep.subr.mxu1 %v5318_v3  ;;  %3647 = vmatprep.subr.mxu0 %v4494_v7 }
  0xa9   :  { %3921 = vmatpush3.msra.mxu1 %v4487_v6  ;;  %3648 = vmatpush3.msra.mxu0 %v4501_v8 }
  0xaa   :  { %3922 = vmatprep.subr.mxu1 %v5318_v3  ;;  %3649 = vmatprep.subr.mxu0 %v4513_v10 }
  0xab   :  { %3923 = vmatpush3.msra.mxu1 %v4506_v9  ;;  %3650 = vmatpush3.msra.mxu0 %v4520_v11 }
  0xac   :  { %3924 = vmatprep.subr.mxu1 %v5318_v3  ;;  %3651 = vmatprep.subr.mxu0 %v4532_v13 }
  0xad   :  { %3925 = vmatpush3.msra.mxu1 %v4525_v12  ;;  %3652 = vmatpush3.msra.mxu0 %v4539_v14 }
  0xae   :  { %3926 = vmatprep.subr.mxu1 %v5318_v3  ;;  %3653 = vmatprep.subr.mxu0 %v4551_v16 }
  0xaf   :  { %3927 = vmatpush3.msra.mxu1 %v4544_v15  ;;  %3654 = vmatpush3.msra.mxu0 %v4558_v17 }
  0xb0   :  { %3928 = vmatprep.subr.mxu1 %v5318_v3  ;;  %3655 = vmatprep.subr.mxu0 %v4570_v19 }
  0xb1   :  { %3929 = vmatpush3.msra.mxu1 %v4563_v18  ;;  %3656 = vmatpush3.msra.mxu0 %v4577_v20 }
  0xb2   :  { %3930 = vmatprep.subr.mxu1 %v5318_v3  ;;  %3657 = vmatprep.subr.mxu0 %v4589_v22 }
  0xb3   :  { %3931 = vmatpush3.msra.mxu1 %v4582_v21  ;;  %3658 = vmatpush3.msra.mxu0 %v4596_v23 }
  0xb4   :  { %3932 = vmatprep.subr.mxu1 %v5318_v3  ;;  %3659 = vmatprep.subr.mxu0 %v4608_v25 }
  0xb5   :  { %3933 = vmatpush3.msra.mxu1 %v4601_v24  ;;  %3660 = vmatpush3.msra.mxu0 %v4615_v26 }
  0xb6   :  { %3934 = vmatprep.subr.mxu1 %v5318_v3  ;;  %3661 = vmatprep.subr.mxu0 %v4627_v28 }
  0xb7   :  { %3935 = vmatpush3.msra.mxu1 %v4620_v27  ;;  %3662 = vmatpush3.msra.mxu0 %v4634_v29 }
  0xb8   :  { %3936 = vmatprep.subr.mxu1 %v5318_v3  ;;  %3663 = vmatprep.subr.mxu0 %v4646_v31 }
  0xb9   :  { %3937 = vmatpush3.msra.mxu1 %v4639_v30  ;;  %3664 = vmatpush3.msra.mxu0 %v4651_v32 }
  0xba   :  { %3938 = vmatprep.subr.mxu1 %v5318_v3  ;;  %3665 = vmatprep.subr.mxu0 %v4663_v34 }
  0xbb   :  { %3939 = vmatpush3.msra.mxu1 %v4656_v33  ;;  %3666 = vmatpush3.msra.mxu0 %v4668_v35 }
  0xbc   :  { %3940 = vmatprep.subr.mxu1 %v5318_v3  ;;  %3667 = vmatprep.subr.mxu0 %v4684_v37 }
  0xbd   :  { %3941 = vmatpush3.msra.mxu1 %v4673_v36  ;;  %3668 = vmatpush3.msra.mxu0 %v4691_v38 }
  0xbe   :  { %3942 = vmatprep.subr.mxu1 %v5318_v3  ;;  %3669 = vmatprep.subr.mxu0 %v4703_v40 }
  0xbf   :  { %3943 = vmatpush3.msra.mxu1 %v4696_v39  ;;  %3670 = vmatpush3.msra.mxu0 %v4710_v41 }
  0xc0   :  { %3944 = vmatprep.subr.mxu1 %v5318_v3  ;;  %3671 = vmatprep.subr.mxu0 %v4722_v43 }
  0xc1   :  { %3945 = vmatpush3.msra.mxu1 %v4715_v42  ;;  %3672 = vmatpush3.msra.mxu0 %v4729_v44 }
  0xc2   :  { %3946 = vmatprep.subr.mxu1 %v5318_v3  ;;  %3673 = vmatprep.subr.mxu0 %v4741_v46 }
  0xc3   :  { %3947 = vmatpush3.msra.mxu1 %v4734_v45  ;;  %3674 = vmatpush3.msra.mxu0 %v4748_v47 }
  0xc4   :  { %3951 = vmatprep.subr.mxu1 %v5318_v3  ;;  %3675 = vmatprep.subr.mxu0 %v4754_v48 }
  0xc5   :  { %3676 = vmatpush3.msra.mxu0 %v4760_v49 }
  0xc6   :  { %3697 = vmatprep.subr.mxu0 %v4475_v1 }
 0x13c   :  { %v180_v50 = vpop.f32.mrf.mxu0  ;;  %v251_v51 = vpop.f32.mrf.mxu1 }
 0x13e   :  { %v182_v52 = vpop.f32.mrf.mxu0  ;;  %v3875_v53 = vpop.f32.mrf.mxu1 }
 0x140   :  { %v324_v54 = vpop.f32.mrf.mxu0  ;;  %v395_v55 = vpop.f32.mrf.mxu1 }
 0x141   :  { %v396_v5 = vadd.f32 %v395_v55, %v251_v51  ;;  %v325_v41 = vadd.f32 %v324_v54, %v180_v50 }
 0x142   :  { %v3880_v56 = vpop.f32.mrf.mxu1  ;;  %v326_v57 = vpop.f32.mrf.mxu0 }
 0x143   :  { %v327_v39 = vadd.f32 %v326_v57, %v182_v52 }
 0x147   :  { %v480_v58 = vpop.f32.mrf.mxu0  ;;  %v551_v59 = vpop.f32.mrf.mxu1 }
 0x148   :  { %v557_v1 = vadd.f32 %v551_v59, %v396_v5 }
 0x149   :  { %v482_v60 = vpop.f32.mrf.mxu0  ;;  %v3885_v61 = vpop.f32.mrf.mxu1 }
 0x14a   :  { %v556_v36 = vadd.f32 %v482_v60, %v327_v39  ;;  %v5388_v60 = vld [vmem:[#allocation14_spill] sm:$0xff] }
 0x14b   :  { %v710_v62 = vpop.f32.mrf.mxu1 }
 0x14c   :  { %v639_v4 = vpop.f32.mrf.mxu0  ;;  %v716_v43 = vadd.f32 %v710_v62, %v557_v1 }
 0x14d   :  { %v3890_v3 = vpop.f32.mrf.mxu1 }
 0x14e   :  { %v641_v48 = vpop.f32.mrf.mxu0  ;;  %v555_v3 = vadd.f32 %v480_v58, %v325_v41  ;;  %v5387_v58 = vld [vmem:[#allocation13_spill] sm:$0xff] }
 0x14f   :  { %v715_v51 = vadd.f32 %v641_v48, %v556_v36  ;;  %v5385_v48 = vld [vmem:[#allocation11_spill] sm:$0xff] }
 0x150   :  { %v859_v49 = vpop.f32.mrf.mxu1  ;;  %v788_v47 = vpop.f32.mrf.mxu0  ;;  %v714_v35 = vadd.f32 %v639_v4, %v555_v3  ;;  %v5392_v3 = vld [vmem:[#allocation18_spill] sm:$0xff] }
 0x151   :  { %v865_v61 = vadd.f32 %v859_v49, %v716_v43  ;;  %v5386_v49 = vld [vmem:[#allocation12_spill] sm:$0xff] }
 0x152   :  { %v3895_v46 = vpop.f32.mrf.mxu1  ;;  %v790_v45 = vpop.f32.mrf.mxu0  ;;  %v863_v33 = vadd.f32 %v788_v47, %v714_v35  ;;  %v5381_v35 = vld [vmem:[#allocation7_spill] sm:$0xff]  ;;  %v5384_v47 = vld [vmem:[#allocation10_spill] sm:$0xff] }
 0x153   :  { %v864_v5 = vadd.f32 %v790_v45, %v715_v51 }
 0x154   :  { %v1018_v44 = vpop.f32.mrf.mxu1  ;;  %v947_v53 = vpop.f32.mrf.mxu0 }
 0x155   :  { %v1024_v34 = vadd.f32 %v1018_v44, %v865_v61  ;;  %v1022_v50 = vadd.f32 %v947_v53, %v863_v33  ;;  %v5389_v53 = vld [vmem:[#allocation15_spill] sm:$0xff]  ;;  %v5391_v61 = vld [vmem:[#allocation17_spill] sm:$0xff] }
 0x156   :  { %v3900_v42 = vpop.f32.mrf.mxu1  ;;  %v949_v56 = vpop.f32.mrf.mxu0 }
 0x157   :  { %v1023_v1 = vadd.f32 %v949_v56, %v864_v5  ;;  %v5390_v56 = vld [vmem:[#allocation16_spill] sm:$0xff] }
 0x158   :  { %v1177_v40 = vpop.f32.mrf.mxu1  ;;  %v1106_v38 = vpop.f32.mrf.mxu0  ;;  %v5394_v5 = vld [vmem:[#allocation20_spill] sm:$0xff] }
 0x159   :  { %v1183_v32 = vadd.f32 %v1177_v40, %v1024_v34  ;;  %v1181_v43 = vadd.f32 %v1106_v38, %v1022_v50  ;;  %v5380_v34 = vmov 0.0   ;;  %v5382_v38 = vld [vmem:[#allocation8_spill] sm:$0xff]  ;;  %v5383_v40 = vld [vmem:[#allocation9_spill] sm:$0xff]  ;;  %v4198_v50 = vmov 0  }
 0x15a   :  { %v3905_v37 = vpop.f32.mrf.mxu1  ;;  %v1108_v55 = vpop.f32.mrf.mxu0  ;;  %4113 = vset.pattern.permute.xlu0 %v4198_v50  ;;  %4114 = vset.pattern.permute.xlu1 %v4198_v50  ;;  %v1502_v50 = vld [vmem:[%s5309_s2] sm:$0xff] }
 0x15b   :  { %v1182_v52 = vadd.f32 %v1108_v55, %v1023_v1  ;;  %v5393_v55 = vld [vmem:[#allocation19_spill] sm:$0xff] }
 0x15f   :  { %v1265_v46 = vpop.f32.mrf.mxu0  ;;  %v1336_v59 = vpop.f32.mrf.mxu1 }
 0x160   :  { %v1342_v54 = vadd.f32 %v1336_v59, %v1183_v32  ;;  %v1340_v4 = vadd.f32 %v1265_v46, %v1181_v43  ;;  %v5395_v46 = vld [vmem:[#allocation21_spill] sm:$0xff]  ;;  %v5396_v59 = vld [vmem:[#allocation22_spill] sm:$0xff] }
 0x161   :  { %v1267_v42 = vpop.f32.mrf.mxu0  ;;  %v3910_v62 = vpop.f32.mrf.mxu1 }
 0x162   :  { %v1341_v36 = vadd.f32 %v1267_v42, %v1182_v52  ;;  %v5397_v42 = vld [vmem:[#allocation23_spill] sm:$0xff]  ;;  %v5398_v62 = vld [vmem:[#allocation24_spill] sm:$0xff] }
 0x163   :  { %v1495_v57 = vpop.f32.mrf.mxu1 }
 0x164   :  { %v4764_v37 = vadd.f32 %v1495_v57, %v1342_v54  ;;  %v1424_v39 = vpop.f32.mrf.mxu0 }
 0x165   :  { %v3915_v41 = vpop.f32.mrf.mxu1  ;;  %v4772_v32 = vadd.f32 %v1424_v39, %v1340_v4 }
 0x166   :  { %v1426_v44 = vpop.f32.mrf.mxu0  ;;  %3949 = vmatmul.mubr.f32.vlgmr.msra.gmra.mxu1 %v4764_v37  ;;  %v1646_v51 = vmul.f32 %v4764_v37, %v4764_v37 }
 0x167   :  { %v4767_v45 = vadd.f32 %v1426_v44, %v1341_v36  ;;  %3952 = vmatpush3.msra.mxu1 %v4462_v63  ;;  %3983 = vmatprep.mubr.msk.f32.mxu1 %vm4190_vm0, %v5380_v34  ;;  %v1644_v1 = vmul.f32 %v4772_v32, %v4772_v32 }
 0x168   :  { %3953 = vmatprep.subr.mxu1 %v5380_v34 }
 0x169   :  { %3954 = vmatpush3.msra.mxu1 %v4469_v0  ;;  %1568 = vmatprep.mubr.f32.mxu0 %v4767_v45  ;;  %v1645_v33 = vmul.f32 %v4767_v45, %v4767_v45 }
 0x16a   :  { %3955 = vmatprep.subr.mxu1 %v5380_v34  ;;  %1569 = vmatmul.mubr.f32.vlgmr.msra.gmra.mxu0 %v4772_v32 }
 0x16b   :  { %3698 = vmatpush3.msra.mxu0 %v4482_v2  ;;  %3956 = vmatpush3.msra.mxu1 %v4487_v6 }
 0x16c   :  { %3699 = vmatprep.subr.mxu0 %v4494_v7  ;;  %1711 = vmatprep.mubr.f32.mxu0 %v1645_v33 }
 0x16d   :  { %3957 = vmatprep.subr.mxu1 %v5380_v34  ;;  %3700 = vmatpush3.msra.mxu0 %v4501_v8 }
 0x16e   :  { %3958 = vmatpush3.msra.mxu1 %v4506_v9  ;;  %3701 = vmatprep.subr.mxu0 %v4513_v10 }
 0x16f   :  { %3959 = vmatprep.subr.mxu1 %v5380_v34  ;;  %3702 = vmatpush3.msra.mxu0 %v4520_v11 }
 0x170   :  { %3960 = vmatpush3.msra.mxu1 %v4525_v12  ;;  %3703 = vmatprep.subr.mxu0 %v4532_v13 }
 0x171   :  { %3961 = vmatprep.subr.mxu1 %v5380_v34  ;;  %3704 = vmatpush3.msra.mxu0 %v4539_v14 }
 0x172   :  { %3962 = vmatpush3.msra.mxu1 %v4544_v15  ;;  %3705 = vmatprep.subr.mxu0 %v4551_v16 }
 0x173   :  { %3963 = vmatprep.subr.mxu1 %v5380_v34  ;;  %3706 = vmatpush3.msra.mxu0 %v4558_v17 }
 0x174   :  { %3964 = vmatpush3.msra.mxu1 %v4563_v18  ;;  %3707 = vmatprep.subr.mxu0 %v4570_v19 }
 0x175   :  { %3965 = vmatprep.subr.mxu1 %v5380_v34  ;;  %3708 = vmatpush3.msra.mxu0 %v4577_v20 }
 0x176   :  { %3966 = vmatpush3.msra.mxu1 %v4582_v21  ;;  %3709 = vmatprep.subr.mxu0 %v4589_v22 }
 0x177   :  { %3967 = vmatprep.subr.mxu1 %v5380_v34  ;;  %3710 = vmatpush3.msra.mxu0 %v4596_v23 }
 0x178   :  { %3968 = vmatpush3.msra.mxu1 %v4601_v24  ;;  %3711 = vmatprep.subr.mxu0 %v4608_v25 }
 0x179   :  { %3969 = vmatprep.subr.mxu1 %v5380_v34  ;;  %3712 = vmatpush3.msra.mxu0 %v4615_v26 }
 0x17a   :  { %3970 = vmatpush3.msra.mxu1 %v4620_v27  ;;  %3713 = vmatprep.subr.mxu0 %v4627_v28 }
 0x17b   :  { %3971 = vmatprep.subr.mxu1 %v5380_v34  ;;  %3714 = vmatpush3.msra.mxu0 %v4634_v29 }
 0x17c   :  { %3972 = vmatpush3.msra.mxu1 %v4639_v30  ;;  %3715 = vmatprep.subr.mxu0 %v4646_v31 }
 0x17d   :  { %3973 = vmatprep.subr.mxu1 %v5380_v34  ;;  %3716 = vmatpush3.msra.mxu0 %v5381_v35 }
 0x17e   :  { %3974 = vmatpush3.msra.mxu1 %v5382_v38  ;;  %3717 = vmatprep.subr.mxu0 %v5383_v40 }
 0x17f   :  { %3975 = vmatprep.subr.mxu1 %v5380_v34  ;;  %3718 = vmatpush3.msra.mxu0 %v5384_v47 }
 0x180   :  { %3976 = vmatpush3.msra.mxu1 %v5385_v48  ;;  %3719 = vmatprep.subr.mxu0 %v5386_v49 }
 0x181   :  { %3977 = vmatprep.subr.mxu1 %v5380_v34  ;;  %3720 = vmatpush3.msra.mxu0 %v5387_v58 }
 0x182   :  { %3978 = vmatpush3.msra.mxu1 %v5388_v60  ;;  %3721 = vmatprep.subr.mxu0 %v5389_v53 }
 0x183   :  { %3979 = vmatprep.subr.mxu1 %v5380_v34  ;;  %3722 = vmatpush3.msra.mxu0 %v5390_v56 }
 0x184   :  { %3980 = vmatpush3.msra.mxu1 %v5391_v61  ;;  %3723 = vmatprep.subr.mxu0 %v5392_v3 }
 0x185   :  { %3981 = vmatprep.subr.mxu1 %v5380_v34  ;;  %3724 = vmatpush3.msra.mxu0 %v5393_v55 }
 0x186   :  { %3982 = vmatpush3.msra.mxu1 %v5394_v5  ;;  %3725 = vmatprep.subr.mxu0 %v5395_v46 }
 0x187   :  { %3984 = vmatmul.mubr.f32.vlgmr.msra.gmra.mxu1 %v1646_v51  ;;  %3726 = vmatpush3.msra.mxu0 %v5396_v59 }
 0x188   :  { %3727 = vmatprep.subr.mxu0 %v5397_v42  ;;  %3986 = vmatprep.subr.mxu1 %v5380_v34 }
 0x189   :  { %3728 = vmatpush3.msra.mxu0 %v5398_v62  ;;  %3988 = vmatprep.mubr.msk.f32.mxu1 %vm4190_vm0, %v5380_v34 }
 0x18a   :  { %1712 = vmatmul.mubr.f32.vlgmr.msra.gmra.mxu0 %v1644_v1 }
 0x18b   :  { %1923 = vmatprep.mubr.f32.mxu0 %v5380_v34 }
 0x226   :  { %v1640_v54 = vpop.f32.mrf.mxu1 }
 0x228   :  { %v3950_v52 = vpop.f32.mrf.mxu1 }
 0x22a   :  { %v3677_v57 = vpop.f32.mrf.mxu0 }
 0x22c   :  { %v3678_v43 = vpop.f32.mrf.mxu0 }
 0x22d   :  { %v3679_v39 = vadd.f32 %v3678_v43, %v3677_v57 }
 0x22f   :  { %v1641_v41 = vadd.f32 %v3679_v39, %v1640_v54  ;;  %v1503_v54 = vld [vmem:[%s5310_s3] sm:$0xff] }
 0x231   :  { %v1787_v51 = vmul.f32 0.00390625, %v1641_v41 }
 0x233   :  { %v1789_v59 = vmul.f32 %v1787_v51, %v1787_v51 }
 0x247   :  { %v1783_v36 = vpop.f32.mrf.mxu1 }
 0x249   :  { %v3985_v4 = vpop.f32.mrf.mxu1 }
 0x24a   :  { %v3729_v44 = vpop.f32.mrf.mxu0 }
 0x24c   :  { %v3730_v33 = vpop.f32.mrf.mxu0 }
 0x24d   :  { %v3731_v62 = vadd.f32 %v3730_v33, %v3729_v44 }
 0x24f   :  { %v1784_v42 = vadd.f32 %v3731_v62, %v1783_v36  ;;  %v5399_v62 = vlaneseq }
 0x251   :  { %v1788_v1 = vmul.f32 0.00390625, %v1784_v42  ;;  %v1818_v42 = vshrl.u32 %v5399_v62, 7 }
 0x253   :  { %v1790_v5 = vsub.f32 %v1788_v1, %v1789_v59  ;;  %v1827_v44 = vsub.s32 2, %v1818_v42 }
 0x255   :  { %v1791_v46 = vmax.f32 %v1790_v5, 0.0  ;;  %v1819_v5 = vsub.s32 0, %v1818_v42 }
 0x257   :  { %v1792_v61 = vadd.f32 1e-05, %v1791_v46  ;;  %v1823_v46 = vsub.s32 1, %v1818_v42 }
 0x259   :  { %4115 = vrsqrt.f32 %v1792_v61  ;;  %v33_v61 = vld [vmem:[%s5314_s7] sm:$0x7] }
 0x25a   :  { %v4864_v62 = vrot.slane %v33_v61, %v1827_v44 }
 0x266   :  { %v4116_v52 = vpop.eup %4115 }
 0x267   :  { %v1794_v57 = vmul.f32 %v4116_v52, %v1502_v50 }
 0x269   :  { %1799 = vperm.xlu0 %4113, %v1794_v57   ;;  %v1795_v43 = vmul.f32 %v1794_v57, %v1787_v51  ;;  %v4860_v51 = vrot.slane %v33_v61, %v1819_v5  ;;  %v4862_v57 = vrot.slane %v33_v61, %v1823_v46 }
 0x26b   :  { %v1796_v39 = vsub.f32 %v1503_v54, %v1795_v43 }
 0x26d   :  { %1807 = vperm.xlu1 %4114, %v1796_v39  }
 0x2e4   :  { %v1800_v59 = vpop.permute.xlu0 %1799 }
 0x2e5   :  { %v1802_v36 = vmul.f32 %v1800_v59, %v4772_v32  ;;  %v1803_v41 = vmul.f32 %v1800_v59, %v4767_v45  ;;  %v1804_v4 = vmul.f32 %v1800_v59, %v4764_v37 }
 0x2e8   :  { %v1808_v33 = vpop.permute.xlu1 %1807 }
 0x2e9   :  { %v1810_v1 = vadd.f32 %v1808_v33, %v1802_v36  ;;  %v1811_v50 = vadd.f32 %v1808_v33, %v1803_v41  ;;  %v1812_v52 = vadd.f32 %v1808_v33, %v1804_v4  ;;  %v3601_v41 = vld [vmem:[%s5311_s4 + $0x8] sm:$0xff] }
 0x2eb   :  { %v1813_v54 = vmax.f32 %v1810_v1, 0.0  ;;  %v1814_v43 = vmax.f32 %v1811_v50, 0.0  ;;  %v1815_v39 = vmax.f32 %v1812_v52, 0.0  ;;  %v1844_v50 = vld [vmem:[%s5311_s4] sm:$0xff] }
 0x2ed   :  { %v4867_v32 = vmul.f32 %v4860_v51, %v1813_v54  ;;  %v4870_v45 = vmul.f32 %v4862_v57, %v1814_v43  ;;  %v4877_v37 = vmul.f32 %v4864_v62, %v1815_v39 }
 0x2ef   :  { %1847 = vrot.lane.b32.xlu0 %v4870_v45, %s4188_s13  ;;  %1845 = vrot.lane.b32.xlu1 %v4867_v32, %s4188_s13 }
 0x2f3   :  { %1835 = vrot.lane.b32.xlu0 %v4867_v32, %s4191_s16  ;;  %1849 = vrot.lane.b32.xlu1 %v4877_v37, %s4188_s13 }
 0x2f7   :  { %1839 = vrot.lane.b32.xlu0 %v4877_v37, %s4191_s16  ;;  %1837 = vrot.lane.b32.xlu1 %v4870_v45, %s4191_s16 }
 0x2fb   :  { %2146 = vrot.lane.b32.xlu0 %v4870_v45, %s4192_s0  ;;  %2144 = vrot.lane.b32.xlu1 %v4867_v32, %s4192_s0 }
 0x2ff   :  { %2302 = vrot.lane.b32.xlu0 %v4867_v32, %s4193_s17  ;;  %2148 = vrot.lane.b32.xlu1 %v4877_v37, %s4192_s0 }
 0x303   :  { %2306 = vrot.lane.b32.xlu0 %v4877_v37, %s4193_s17  ;;  %2304 = vrot.lane.b32.xlu1 %v4870_v45, %s4193_s17 }
 0x307   :  { %2613 = vrot.lane.b32.xlu0 %v4877_v37, %s4194_s18  ;;  %2611 = vrot.lane.b32.xlu1 %v4870_v45, %s4194_s18 }
 0x30b   :  { %2769 = vrot.lane.b32.xlu0 %v4870_v45, %s4195_s19  ;;  %2609 = vrot.lane.b32.xlu1 %v4867_v32, %s4194_s18 }
 0x30f   :  { %2767 = vrot.lane.b32.xlu0 %v4867_v32, %s4195_s19  ;;  %2771 = vrot.lane.b32.xlu1 %v4877_v37, %s4195_s19 }
 0x313   :  { %2929 = vrot.lane.b32.xlu0 %v4877_v37, %s4196_s20  ;;  %2927 = vrot.lane.b32.xlu1 %v4870_v45, %s4196_s20 }
 0x317   :  { %3085 = vrot.lane.b32.xlu0 %v4870_v45, %s4197_s21  ;;  %2925 = vrot.lane.b32.xlu1 %v4867_v32, %s4196_s20 }
 0x31b   :  { %3083 = vrot.lane.b32.xlu0 %v4867_v32, %s4197_s21  ;;  %3087 = vrot.lane.b32.xlu1 %v4877_v37, %s4197_s21 }
 0x361   :  { %v1848_v42 = vpop.permute.xlu0 %1847  ;;  %v1846_v59 = vpop.permute.xlu1 %1845 }
 0x362   :  { %v1852_v46 = vsel %vm104_vm1, %v1846_v59, %v1848_v42 }
 0x363   :  { %1889 = vmatprep.subr.mxu0 %v1852_v46 }
 0x365   :  { %v1836_v61 = vpop.permute.xlu0 %1835  ;;  %v1850_v36 = vpop.permute.xlu1 %1849 }
 0x366   :  { %v1851_v4 = vsel %vm104_vm1, %v1848_v42, %v1850_v36  ;;  %v1853_v44 = vsel %vm104_vm1, %v1850_v36, %v1846_v59  ;;  %v3606_v36 = vld [vmem:[%s5311_s4 + $0x10] sm:$0xff] }
 0x367   :  { %1890 = vmatpush1.msra.mxu0 %v1853_v44  ;;  %3987 = vmatpush3.msra.mxu1 %v1851_v4 }
 0x368   :  { %3991 = vmatprep.subr.mxu1 %v5380_v34  ;;  %3989 = vmatmul.mubr.msk.f32.vlgmr.msra.gmra.mxu1 %vm110_vm2, %v3601_v41 }
 0x369   :  { %v1840_v33 = vpop.permute.xlu0 %1839  ;;  %v1838_v1 = vpop.permute.xlu1 %1837  ;;  %3602 = vmatmul.mubr.msk.f32.vlgmr.msra.gmra.mxu0 %vm110_vm2, %v3601_v41  ;;  %3993 = vmatprep.mubr.msk.f32.mxu1 %vm4190_vm0, %v5380_v34 }
 0x36a   :  { %v1843_v52 = vsel %vm93_vm3, %v1840_v33, %v1836_v61  ;;  %v1841_v54 = vsel %vm93_vm3, %v1838_v1, %v1840_v33  ;;  %v1842_v43 = vsel %vm93_vm3, %v1836_v61, %v1838_v1  ;;  %2067 = vmatprep.mubr.f32.mxu0 %v5380_v34 }
 0x36b   :  { %2033 = vmatprep.subr.mxu0 %v1842_v43  ;;  %3992 = vmatpush3.msra.mxu1 %v1841_v54  ;;  %v3609_v54 = vld [vmem:[%s5311_s4 + $0x18] sm:$0xff] }
 0x36c   :  { %2034 = vmatpush1.msra.mxu0 %v1843_v52  ;;  %3994 = vmatmul.mubr.msk.f32.vlgmr.msra.gmra.mxu1 %vm110_vm2, %v1844_v50 }
 0x36d   :  { %v2147_v39 = vpop.permute.xlu0 %2146  ;;  %v2145_v42 = vpop.permute.xlu1 %2144  ;;  %3604 = vmatmul.mubr.msk.f32.vlgmr.msra.gmra.mxu0 %vm110_vm2, %v1844_v50  ;;  %3996 = vmatprep.subr.mxu1 %v5380_v34 }
 0x36e   :  { %v2151_v59 = vsel %vm405_vm4, %v2145_v42, %v2147_v39  ;;  %2222 = vmatprep.mubr.f32.mxu0 %v5380_v34  ;;  %3998 = vmatprep.mubr.msk.f32.mxu1 %vm4190_vm0, %v5380_v34 }
 0x36f   :  { %2188 = vmatprep.subr.mxu0 %v2151_v59  ;;  %v3612_v59 = vld [vmem:[%s5311_s4 + $0x20] sm:$0xff] }
 0x371   :  { %v2303_v46 = vpop.permute.xlu0 %2302  ;;  %v2149_v61 = vpop.permute.xlu1 %2148 }
 0x372   :  { %v2150_v41 = vsel %vm405_vm4, %v2147_v39, %v2149_v61  ;;  %v2152_v4 = vsel %vm405_vm4, %v2149_v61, %v2145_v42 }
 0x373   :  { %2189 = vmatpush1.msra.mxu0 %v2152_v4  ;;  %3997 = vmatpush3.msra.mxu1 %v2150_v41 }
 0x374   :  { %3607 = vmatmul.mubr.msk.f32.vlgmr.msra.gmra.mxu0 %vm110_vm2, %v3606_v36  ;;  %3999 = vmatmul.mubr.msk.f32.vlgmr.msra.gmra.mxu1 %vm110_vm2, %v3606_v36 }
 0x375   :  { %v2307_v44 = vpop.permute.xlu0 %2306  ;;  %v2305_v33 = vpop.permute.xlu1 %2304  ;;  %4001 = vmatprep.subr.mxu1 %v5380_v34  ;;  %2380 = vmatprep.mubr.f32.mxu0 %v5380_v34 }
 0x376   :  { %v2310_v1 = vsel %vm564_vm5, %v2307_v44, %v2303_v46  ;;  %v2308_v50 = vsel %vm564_vm5, %v2305_v33, %v2307_v44  ;;  %v2309_v52 = vsel %vm564_vm5, %v2303_v46, %v2305_v33  ;;  %4003 = vmatprep.mubr.msk.f32.mxu1 %vm4190_vm0, %v5380_v34 }
 0x377   :  { %2346 = vmatprep.subr.mxu0 %v2309_v52  ;;  %4002 = vmatpush3.msra.mxu1 %v2308_v50 }
 0x378   :  { %2347 = vmatpush1.msra.mxu0 %v2310_v1  ;;  %4006 = vmatprep.subr.mxu1 %v5380_v34  ;;  %v3618_v1 = vld [vmem:[%s5311_s4 + $0x30] sm:$0xff] }
 0x379   :  { %v2614_v43 = vpop.permute.xlu0 %2613  ;;  %3610 = vmatmul.mubr.msk.f32.vlgmr.msra.gmra.mxu0 %vm110_vm2, %v3609_v54  ;;  %4004 = vmatmul.mubr.msk.f32.vlgmr.msra.gmra.mxu1 %vm110_vm2, %v3609_v54  ;;  %v2612_v39 = vpop.permute.xlu1 %2611 }
 0x37a   :  { %2495 = vmatprep.subr.mxu0 %v4870_v45  ;;  %4007 = vmatpush3.msra.mxu1 %v4877_v37  ;;  %v2615_v42 = vsel %vm872_vm6, %v2612_v39, %v2614_v43 }
 0x37b   :  { %2496 = vmatpush1.msra.mxu0 %v4867_v32  ;;  %2529 = vmatprep.mubr.f32.mxu0 %v5380_v34  ;;  %v3615_v32 = vld [vmem:[%s5311_s4 + $0x28] sm:$0xff] }
 0x37c   :  { %2653 = vmatprep.subr.mxu0 %v2615_v42  ;;  %4008 = vmatprep.mubr.msk.f32.mxu1 %vm4190_vm0, %v5380_v34  ;;  %v3621_v42 = vld [vmem:[%s5311_s4 + $0x38] sm:$0xff] }
 0x37d   :  { %v2770_v46 = vpop.permute.xlu0 %2769  ;;  %3613 = vmatmul.mubr.msk.f32.vlgmr.msra.gmra.mxu0 %vm110_vm2, %v3612_v59  ;;  %4009 = vmatmul.mubr.msk.f32.vlgmr.msra.gmra.mxu1 %vm110_vm2, %v3612_v59  ;;  %v2610_v45 = vpop.permute.xlu1 %2609 }
 0x37e   :  { %v2616_v37 = vsel %vm872_vm6, %v2610_v45, %v2612_v39  ;;  %v2617_v61 = vsel %vm872_vm6, %v2614_v43, %v2610_v45  ;;  %4011 = vmatprep.subr.mxu1 %v5380_v34  ;;  %2687 = vmatprep.mubr.f32.mxu0 %v5380_v34 }
 0x37f   :  { %2654 = vmatpush1.msra.mxu0 %v2616_v37  ;;  %4012 = vmatpush3.msra.mxu1 %v2617_v61  ;;  %v3624_v61 = vld [vmem:[%s5311_s4 + $0x40] sm:$0xff] }
 0x380   :  { %4013 = vmatprep.mubr.msk.f32.mxu1 %vm4190_vm0, %v5380_v34  ;;  %4016 = vmatprep.subr.mxu1 %v5380_v34 }
 0x381   :  { %v2768_v36 = vpop.permute.xlu0 %2767  ;;  %3616 = vmatmul.mubr.msk.f32.vlgmr.msra.gmra.mxu0 %vm110_vm2, %v3615_v32  ;;  %4014 = vmatmul.mubr.msk.f32.vlgmr.msra.gmra.mxu1 %vm110_vm2, %v3615_v32  ;;  %v2772_v41 = vpop.permute.xlu1 %2771 }
 0x382   :  { %v2774_v4 = vsel %vm1031_vm7, %v2768_v36, %v2770_v46  ;;  %v2775_v44 = vsel %vm1031_vm7, %v2772_v41, %v2768_v36  ;;  %v2773_v33 = vsel %vm1031_vm7, %v2770_v46, %v2772_v41  ;;  %2845 = vmatprep.mubr.f32.mxu0 %v5380_v34  ;;  %4018 = vmatprep.mubr.msk.f32.mxu1 %vm4190_vm0, %v5380_v34 }
 0x383   :  { %2811 = vmatprep.subr.mxu0 %v2773_v33  ;;  %4017 = vmatpush3.msra.mxu1 %v2775_v44 }
 0x384   :  { %2812 = vmatpush1.msra.mxu0 %v2774_v4  ;;  %4021 = vmatprep.subr.mxu1 %v5380_v34  ;;  %v5401_v4 = vld [vmem:[#allocation6_spill] sm:$0xff] }
 0x385   :  { %v2930_v50 = vpop.permute.xlu0 %2929  ;;  %3619 = vmatmul.mubr.msk.f32.vlgmr.msra.gmra.mxu0 %vm110_vm2, %v3618_v1  ;;  %4019 = vmatmul.mubr.msk.f32.vlgmr.msra.gmra.mxu1 %vm110_vm2, %v3618_v1  ;;  %v2928_v52 = vpop.permute.xlu1 %2927 }
 0x386   :  { %v2931_v54 = vsel %vm1190_vm8, %v2928_v52, %v2930_v50  ;;  %3003 = vmatprep.mubr.f32.mxu0 %v5380_v34  ;;  %4023 = vmatprep.mubr.msk.f32.mxu1 %vm4190_vm0, %v5380_v34 }
 0x387   :  { %2969 = vmatprep.subr.mxu0 %v2931_v54 }
 0x389   :  { %v3086_v43 = vpop.permute.xlu0 %3085  ;;  %v2926_v39 = vpop.permute.xlu1 %2925 }
 0x38a   :  { %v2932_v59 = vsel %vm1190_vm8, %v2926_v39, %v2928_v52  ;;  %v2933_v46 = vsel %vm1190_vm8, %v2930_v50, %v2926_v39 }
 0x38b   :  { %2970 = vmatpush1.msra.mxu0 %v2932_v59  ;;  %4022 = vmatpush3.msra.mxu1 %v2933_v46 }
 0x38c   :  { %3622 = vmatmul.mubr.msk.f32.vlgmr.msra.gmra.mxu0 %vm110_vm2, %v3621_v42  ;;  %4024 = vmatmul.mubr.msk.f32.vlgmr.msra.gmra.mxu1 %vm110_vm2, %v3621_v42 }
 0x38d   :  { %v3084_v45 = vpop.permute.xlu0 %3083  ;;  %v3088_v37 = vpop.permute.xlu1 %3087  ;;  %4026 = vmatprep.subr.mxu1 %v5380_v34  ;;  %4028 = vmatprep.mubr.msk.f32.mxu1 %vm4190_vm0, %v5380_v34 }
 0x38e   :  { %v3090_v32 = vsel %vm1349_vm9, %v3084_v45, %v3086_v43  ;;  %v3091_v36 = vsel %vm1349_vm9, %v3088_v37, %v3084_v45  ;;  %v3089_v41 = vsel %vm1349_vm9, %v3086_v43, %v3088_v37  ;;  %3161 = vmatprep.mubr.f32.mxu0 %v5380_v34 }
 0x38f   :  { %3127 = vmatprep.subr.mxu0 %v3089_v41  ;;  %4027 = vmatpush3.msra.mxu1 %v3091_v36 }
 0x390   :  { %3128 = vmatpush1.msra.mxu0 %v3090_v32  ;;  %4029 = vmatmul.mubr.msk.f32.vlgmr.msra.gmra.mxu1 %vm110_vm2, %v3624_v61 }
 0x391   :  { %3625 = vmatmul.mubr.msk.f32.vlgmr.msra.gmra.mxu0 %vm110_vm2, %v3624_v61  ;;  %4031 = vmatprep.subr.mxu1 %v5380_v34 }
 0x392   :  { %4032 = vmatpush3.msra.mxu1 %v4462_v63  ;;  %3767 = vmatprep.subr.mxu0 %v5401_v4  ;;  %v5402_v63 = vld [vmem:[#allocation17_spill] sm:$0xff] }
 0x393   :  { %4033 = vmatprep.subr.mxu1 %v5380_v34  ;;  %3768 = vmatpush3.msra.mxu0 %v4482_v2  ;;  %v5404_v2 = vld [vmem:[#allocation20_spill] sm:$0xff] }
 0x394   :  { %4034 = vmatpush3.msra.mxu1 %v4469_v0  ;;  %3769 = vmatprep.subr.mxu0 %v4494_v7  ;;  %v5403_v0 = vld [vmem:[#allocation21_spill] sm:$0xff]  ;;  %v5406_v7 = vld [vmem:[#allocation23_spill] sm:$0xff] }
 0x395   :  { %4035 = vmatprep.subr.mxu1 %v5380_v34  ;;  %3770 = vmatpush3.msra.mxu0 %v4501_v8  ;;  %v5407_v8 = vld [vmem:[#allocation24_spill] sm:$0xff] }
 0x396   :  { %4036 = vmatpush3.msra.mxu1 %v4487_v6  ;;  %3771 = vmatprep.subr.mxu0 %v4513_v10  ;;  %v5405_v6 = vld [vmem:[#allocation22_spill] sm:$0xff] }
 0x397   :  { %4037 = vmatprep.subr.mxu1 %v5380_v34  ;;  %3772 = vmatpush3.msra.mxu0 %v4520_v11 }
 0x398   :  { %4038 = vmatpush3.msra.mxu1 %v4506_v9  ;;  %3773 = vmatprep.subr.mxu0 %v4532_v13 }
 0x399   :  { %4039 = vmatprep.subr.mxu1 %v5380_v34  ;;  %3774 = vmatpush3.msra.mxu0 %v4539_v14 }
 0x39a   :  { %4040 = vmatpush3.msra.mxu1 %v4525_v12  ;;  %3775 = vmatprep.subr.mxu0 %v4551_v16 }
 0x39b   :  { %4041 = vmatprep.subr.mxu1 %v5380_v34  ;;  %3776 = vmatpush3.msra.mxu0 %v4558_v17 }
 0x39c   :  { %4042 = vmatpush3.msra.mxu1 %v4544_v15  ;;  %3777 = vmatprep.subr.mxu0 %v4570_v19 }
 0x39d   :  { %4043 = vmatprep.subr.mxu1 %v5380_v34  ;;  %3778 = vmatpush3.msra.mxu0 %v4577_v20 }
 0x39e   :  { %4044 = vmatpush3.msra.mxu1 %v4563_v18  ;;  %3779 = vmatprep.subr.mxu0 %v4589_v22 }
 0x39f   :  { %4045 = vmatprep.subr.mxu1 %v5380_v34  ;;  %3780 = vmatpush3.msra.mxu0 %v4596_v23 }
 0x3a0   :  { %4046 = vmatpush3.msra.mxu1 %v4582_v21  ;;  %3781 = vmatprep.subr.mxu0 %v4608_v25 }
 0x3a1   :  { %4047 = vmatprep.subr.mxu1 %v5380_v34  ;;  %3782 = vmatpush3.msra.mxu0 %v4615_v26 }
 0x3a2   :  { %4048 = vmatpush3.msra.mxu1 %v4601_v24  ;;  %3783 = vmatprep.subr.mxu0 %v4627_v28 }
 0x3a3   :  { %4049 = vmatprep.subr.mxu1 %v5380_v34  ;;  %3784 = vmatpush3.msra.mxu0 %v4634_v29 }
 0x3a4   :  { %4050 = vmatpush3.msra.mxu1 %v4620_v27  ;;  %3785 = vmatprep.subr.mxu0 %v4646_v31 }
 0x3a5   :  { %4051 = vmatprep.subr.mxu1 %v5380_v34  ;;  %3786 = vmatpush3.msra.mxu0 %v5381_v35 }
 0x3a6   :  { %4052 = vmatpush3.msra.mxu1 %v4639_v30  ;;  %3787 = vmatprep.subr.mxu0 %v5383_v40 }
 0x3a7   :  { %4053 = vmatprep.subr.mxu1 %v5380_v34  ;;  %3788 = vmatpush3.msra.mxu0 %v5384_v47 }
 0x3a8   :  { %4054 = vmatpush3.msra.mxu1 %v5382_v38  ;;  %3789 = vmatprep.subr.mxu0 %v5386_v49 }
 0x3a9   :  { %4055 = vmatprep.subr.mxu1 %v5380_v34  ;;  %3790 = vmatpush3.msra.mxu0 %v5387_v58 }
 0x3aa   :  { %4056 = vmatpush3.msra.mxu1 %v5385_v48  ;;  %3791 = vmatprep.subr.mxu0 %v5389_v53 }
 0x3ab   :  { %4057 = vmatprep.subr.mxu1 %v5380_v34  ;;  %3792 = vmatpush3.msra.mxu0 %v5390_v56 }
 0x3ac   :  { %4058 = vmatpush3.msra.mxu1 %v5388_v60  ;;  %3793 = vmatprep.subr.mxu0 %v5392_v3 }
 0x3ad   :  { %4059 = vmatprep.subr.mxu1 %v5380_v34  ;;  %3794 = vmatpush3.msra.mxu0 %v5393_v55 }
 0x3ae   :  { %4060 = vmatpush3.msra.mxu1 %v5402_v63  ;;  %3795 = vmatprep.subr.mxu0 %v5403_v0 }
 0x3af   :  { %4061 = vmatprep.subr.mxu1 %v5380_v34  ;;  %4063 = vmatprep.mubr.msk.f32.mxu1 %vm4190_vm0, %v5380_v34 }
 0x3b0   :  { %4062 = vmatpush3.msra.mxu1 %v5404_v2  ;;  %3796 = vmatpush3.msra.mxu0 %v5405_v6 }
 0x3b1   :  { %4066 = vmatprep.subr.mxu1 %v5380_v34  ;;  %3797 = vmatprep.subr.mxu0 %v5406_v7 }
 0x3b2   :  { %3798 = vmatpush3.msra.mxu0 %v5407_v8  ;;  %v4119_v8 = vld [vmem:[%s5315_s8 + $0x178] sm:$0xff] }
 0x3b3   :  { %3819 = vmatprep.subr.mxu0 %v5401_v4 }
 0x428   :  { %v1996_v9 = vpop.f32.mrf.mxu1 }
 0x429   :  { %v1925_v10 = vpop.f32.mrf.mxu0 }
 0x42a   :  { %v3990_v11 = vpop.f32.mrf.mxu1 }
 0x42b   :  { %v1927_v12 = vpop.f32.mrf.mxu0 }
 0x42c   :  { %v2140_v13 = vpop.f32.mrf.mxu1 }
 0x42d   :  { %v2069_v14 = vpop.f32.mrf.mxu0  ;;  %v2141_v23 = vadd.f32 %v2140_v13, %v1996_v9  ;;  %v4122_v13 = vld [vmem:[%s5315_s8 + $0x168] sm:$0xff] }
 0x42e   :  { %v3995_v15 = vpop.f32.mrf.mxu1  ;;  %v2070_v48 = vadd.f32 %v2069_v14, %v1925_v10  ;;  %v4120_v10 = vld [vmem:[%s5315_s8 + $0x170] sm:$0xff] }
 0x42f   :  { %v2071_v16 = vpop.f32.mrf.mxu0  ;;  %v4123_v14 = vld [vmem:[%s5315_s8 + $0xf0] sm:$0xff] }
 0x430   :  { %v2072_v58 = vadd.f32 %v2071_v16, %v1927_v12  ;;  %v4121_v12 = vld [vmem:[%s5315_s8 + $0x78] sm:$0xff]  ;;  %v4124_v15 = vld [vmem:[%s5315_s8 + $0x70] sm:$0xff]  ;;  %v4125_v16 = vld [vmem:[%s5315_s8 + $0x160] sm:$0xff] }
 0x434   :  { %v2224_v17 = vpop.f32.mrf.mxu0  ;;  %v2295_v18 = vpop.f32.mrf.mxu1 }
 0x435   :  { %v2301_v28 = vadd.f32 %v2295_v18, %v2141_v23  ;;  %v2299_v55 = vadd.f32 %v2224_v17, %v2070_v48  ;;  %v4126_v17 = vld [vmem:[%s5315_s8 + $0xe8] sm:$0xff]  ;;  %v4132_v23 = vld [vmem:[%s5315_s8 + $0xd8] sm:$0xff] }
 0x436   :  { %v2226_v19 = vpop.f32.mrf.mxu0  ;;  %v4000_v20 = vpop.f32.mrf.mxu1  ;;  %v4127_v18 = vld [vmem:[%s5315_s8 + $0x68] sm:$0xff]  ;;  %v4145_v48 = vld [vmem:[%s5315_s8 + $0x38] sm:$0xff] }
 0x437   :  { %v2300_v3 = vadd.f32 %v2226_v19, %v2072_v58  ;;  %v4128_v19 = vld [vmem:[%s5315_s8 + $0x158] sm:$0xff]  ;;  %v4129_v20 = vld [vmem:[%s5315_s8 + $0xe0] sm:$0xff]  ;;  %v4147_v58 = vld [vmem:[%s5315_s8 + $0xb0] sm:$0xff] }
 0x439   :  { %v2382_v21 = vpop.f32.mrf.mxu0  ;;  %v2453_v22 = vpop.f32.mrf.mxu1 }
 0x43a   :  { %v2459_v38 = vadd.f32 %v2453_v22, %v2301_v28  ;;  %v2457_v33 = vadd.f32 %v2382_v21, %v2299_v55  ;;  %v4130_v21 = vld [vmem:[%s5315_s8 + $0x60] sm:$0xff]  ;;  %v4131_v22 = vld [vmem:[%s5315_s8 + $0x150] sm:$0xff]  ;;  %v4152_v55 = vld [vmem:[%s5315_s8 + $0x118] sm:$0xff] }
 0x43b   :  { %v2384_v24 = vpop.f32.mrf.mxu0  ;;  %v4005_v25 = vpop.f32.mrf.mxu1  ;;  %v4137_v28 = vld [vmem:[%s5315_s8 + $0x140] sm:$0xff] }
 0x43c   :  { %v2458_v5 = vadd.f32 %v2384_v24, %v2300_v3  ;;  %v4133_v24 = vld [vmem:[%s5315_s8 + $0x58] sm:$0xff]  ;;  %v4134_v25 = vld [vmem:[%s5315_s8 + $0x148] sm:$0xff] }
 0x43d   :  { %v2531_v26 = vpop.f32.mrf.mxu0  ;;  %v2602_v27 = vpop.f32.mrf.mxu1  ;;  %v4151_v3 = vld [vmem:[%s5315_s8 + $0x28] sm:$0xff] }
 0x43e   :  { %v2608_v53 = vadd.f32 %v2602_v27, %v2459_v38  ;;  %v2606_v43 = vadd.f32 %v2531_v26, %v2457_v33  ;;  %v4135_v26 = vld [vmem:[%s5315_s8 + $0xd0] sm:$0xff]  ;;  %v4142_v38 = vld [vmem:[%s5315_s8 + $0x40] sm:$0xff] }
 0x43f   :  { %v2533_v29 = vpop.f32.mrf.mxu0  ;;  %v4010_v30 = vpop.f32.mrf.mxu1  ;;  %v4136_v27 = vld [vmem:[%s5315_s8 + $0x50] sm:$0xff] }
 0x440   :  { %v2607_v50 = vadd.f32 %v2533_v29, %v2458_v5  ;;  %v4138_v29 = vld [vmem:[%s5315_s8 + $0xc8] sm:$0xff]  ;;  %v4153_v5 = vld [vmem:[%s5315_s8 + $0xa0] sm:$0xff]  ;;  %v4155_v33 = vld [vmem:[%s5315_s8 + $0x110] sm:$0xff] }
 0x441   :  { %v2689_v31 = vpop.f32.mrf.mxu0  ;;  %v2760_v35 = vpop.f32.mrf.mxu1  ;;  %v4139_v30 = vld [vmem:[%s5315_s8 + $0x48] sm:$0xff] }
 0x442   :  { %v2766_v1 = vadd.f32 %v2760_v35, %v2608_v53  ;;  %v2764_v45 = vadd.f32 %v2689_v31, %v2606_v43  ;;  %v4140_v31 = vld [vmem:[%s5315_s8 + $0x138] sm:$0xff]  ;;  %v4141_v35 = vld [vmem:[%s5315_s8 + $0xc0] sm:$0xff] }
 0x443   :  { %v2691_v40 = vpop.f32.mrf.mxu0  ;;  %v4015_v47 = vpop.f32.mrf.mxu1  ;;  %v4149_v53 = vld [vmem:[%s5315_s8 + $0x120] sm:$0xff] }
 0x444   :  { %v2765_v42 = vadd.f32 %v2691_v40, %v2607_v50  ;;  %v4143_v40 = vld [vmem:[%s5315_s8 + $0x130] sm:$0xff]  ;;  %v4144_v47 = vld [vmem:[%s5315_s8 + $0xb8] sm:$0xff] }
 0x445   :  { %v2918_v49 = vpop.f32.mrf.mxu1  ;;  %v2847_v60 = vpop.f32.mrf.mxu0  ;;  %v4157_v50 = vld [vmem:[%s5315_s8 + $0x18] sm:$0xff] }
 0x446   :  { %v2924_v39 = vadd.f32 %v2918_v49, %v2766_v1  ;;  %v2922_v36 = vadd.f32 %v2847_v60, %v2764_v45  ;;  %v4146_v49 = vld [vmem:[%s5315_s8 + $0x128] sm:$0xff]  ;;  %v4148_v60 = vld [vmem:[%s5315_s8 + $0x30] sm:$0xff]  ;;  %v4156_v1 = vld [vmem:[%s5315_s8 + $0x98] sm:$0xff] }
 0x447   :  { %v4020_v56 = vpop.f32.mrf.mxu1  ;;  %v2849_v44 = vpop.f32.mrf.mxu0  ;;  %v4164_v45 = vld [vmem:[%s5315_s8 + $0x80] sm:$0xff] }
 0x448   :  { %v2923_v61 = vadd.f32 %v2849_v44, %v2765_v42  ;;  %v4150_v56 = vld [vmem:[%s5315_s8 + $0xa8] sm:$0xff]  ;;  %v4154_v44 = vld [vmem:[%s5315_s8 + $0x20] sm:$0xff] }
 0x449   :  { %v4161_v42 = vld [vmem:[%s5315_s8 + $0x100] sm:$0xff] }
 0x44c   :  { %v3005_v52 = vpop.f32.mrf.mxu0  ;;  %v3076_v54 = vpop.f32.mrf.mxu1 }
 0x44d   :  { %v3082_v37 = vadd.f32 %v3076_v54, %v2924_v39  ;;  %v3080_v2 = vadd.f32 %v3005_v52, %v2922_v36  ;;  %v4158_v52 = vld [vmem:[%s5315_s8 + $0x108] sm:$0xff]  ;;  %v4159_v54 = vld [vmem:[%s5315_s8 + $0x90] sm:$0xff] }
 0x44e   :  { %v3007_v59 = vpop.f32.mrf.mxu0  ;;  %v4025_v46 = vpop.f32.mrf.mxu1  ;;  %v4160_v39 = vld [vmem:[%s5315_s8 + $0x10] sm:$0xff] }
 0x44f   :  { %v3081_v63 = vadd.f32 %v3007_v59, %v2923_v61  ;;  %v4162_v59 = vld [vmem:[%s5315_s8 + $0x88] sm:$0xff] }
 0x450   :  { %v3234_v32 = vpop.f32.mrf.mxu1 }
 0x451   :  { %v5119_v41 = vadd.f32 %v3234_v32, %v3082_v37  ;;  %v3163_v4 = vpop.f32.mrf.mxu0  ;;  %v4165_v37 = vld [vmem:[%s5315_s8] sm:$0xff] }
 0x452   :  { %v4030_v0 = vpop.f32.mrf.mxu1  ;;  %v5129_v9 = vadd.f32 %v3163_v4, %v3080_v2 }
 0x453   :  { %v3165_v6 = vpop.f32.mrf.mxu0  ;;  %4064 = vmatmul.mubr.f32.vlgmr.msra.gmra.mxu1 %v5119_v41  ;;  %v3385_v43 = vmul.f32 %v5119_v41, %v5119_v41 }
 0x454   :  { %v5122_v7 = vadd.f32 %v3165_v6, %v3081_v63  ;;  %4067 = vmatpush3.msra.mxu1 %v4119_v8  ;;  %4098 = vmatprep.mubr.msk.f32.mxu1 %vm4190_vm0, %v5380_v34  ;;  %v3383_v46 = vmul.f32 %v5129_v9, %v5129_v9 }
 0x455   :  { %4068 = vmatprep.subr.mxu1 %v5380_v34 }
 0x456   :  { %4069 = vmatpush3.msra.mxu1 %v4120_v10  ;;  %3307 = vmatprep.mubr.f32.mxu0 %v5122_v7  ;;  %v3384_v11 = vmul.f32 %v5122_v7, %v5122_v7 }
 0x457   :  { %4070 = vmatprep.subr.mxu1 %v5380_v34  ;;  %3308 = vmatmul.mubr.f32.vlgmr.msra.gmra.mxu0 %v5129_v9 }
 0x458   :  { %3820 = vmatpush3.msra.mxu0 %v4121_v12  ;;  %4071 = vmatpush3.msra.mxu1 %v4122_v13 }
 0x459   :  { %3821 = vmatprep.subr.mxu0 %v4123_v14  ;;  %3450 = vmatprep.mubr.f32.mxu0 %v3384_v11 }
 0x45a   :  { %4072 = vmatprep.subr.mxu1 %v5380_v34  ;;  %3822 = vmatpush3.msra.mxu0 %v4124_v15 }
 0x45b   :  { %4073 = vmatpush3.msra.mxu1 %v4125_v16  ;;  %3823 = vmatprep.subr.mxu0 %v4126_v17 }
 0x45c   :  { %4074 = vmatprep.subr.mxu1 %v5380_v34  ;;  %3824 = vmatpush3.msra.mxu0 %v4127_v18 }
 0x45d   :  { %4075 = vmatpush3.msra.mxu1 %v4128_v19  ;;  %3825 = vmatprep.subr.mxu0 %v4129_v20  ;;  %v3241_v19 = vld [vmem:[%s5312_s5] sm:$0xff]  ;;  %s4199_s5 = smov [#allocation2]  }
 0x45e   :  { %4076 = vmatprep.subr.mxu1 %v5380_v34  ;;  %3826 = vmatpush3.msra.mxu0 %v4130_v21  ;;  %s3567_s18 = sshll.u32 %s4199_s5, 4  ;;  %s3568_s18 = int_to_ptr.vmem [resolvable:$true] %s3567_s18 }
 0x45f   :  { %4077 = vmatpush3.msra.mxu1 %v4131_v22  ;;  %3827 = vmatprep.subr.mxu0 %v4132_v23  ;;  %v3242_v22 = vld [vmem:[%s5313_s6] sm:$0xff]  ;;  %s4166_s6 = scalar_lea.vmem %s3568_s18, 384  ;;  %p4171_p1 = scmp.lt.s32.totalorder %s3568_s18, %s3568_s18 }
 0x460   :  { %4078 = vmatprep.subr.mxu1 %v5380_v34  ;;  %3828 = vmatpush3.msra.mxu0 %v4133_v24  ;;  %p4167_p0 = scmp.ne.s32.totalorder %s3568_s18, %s4166_s6  ;;  %p4172_p2 = scmp.lt.s32.totalorder %s4166_s6, %s4166_s6 }
 0x461   :  { %4079 = vmatpush3.msra.mxu1 %v4134_v25  ;;  %3829 = vmatprep.subr.mxu0 %v4135_v26 }
 0x462   :  { %4080 = vmatprep.subr.mxu1 %v5380_v34  ;;  %3830 = vmatpush3.msra.mxu0 %v4136_v27  ;;  %p4173_p3 = por %p4172_p2, %p4171_p1 }
 0x463   :  { %4081 = vmatpush3.msra.mxu1 %v4137_v28  ;;  %3831 = vmatprep.subr.mxu0 %v4138_v29 }
 0x464   :  { %4082 = vmatprep.subr.mxu1 %v5380_v34  ;;  %3832 = vmatpush3.msra.mxu0 %v4139_v30  ;;  %p4174_p4 = pnand %p4173_p3, %p4167_p0 }
 0x465   :  { %4083 = vmatpush3.msra.mxu1 %v4140_v31  ;;  %3833 = vmatprep.subr.mxu0 %v4141_v35 }
 0x466   :  { %4084 = vmatprep.subr.mxu1 %v5380_v34  ;;  %3834 = vmatpush3.msra.mxu0 %v4142_v38 }
 0x467   :  { %4085 = vmatpush3.msra.mxu1 %v4143_v40  ;;  %3835 = vmatprep.subr.mxu0 %v4144_v47 }
 0x468   :  { %4086 = vmatprep.subr.mxu1 %v5380_v34  ;;  %3836 = vmatpush3.msra.mxu0 %v4145_v48 }
 0x469   :  { %4087 = vmatpush3.msra.mxu1 %v4146_v49  ;;  %3837 = vmatprep.subr.mxu0 %v4147_v58 }
 0x46a   :  { %4088 = vmatprep.subr.mxu1 %v5380_v34  ;;  %3838 = vmatpush3.msra.mxu0 %v4148_v60 }
 0x46b   :  { %4089 = vmatpush3.msra.mxu1 %v4149_v53  ;;  %3839 = vmatprep.subr.mxu0 %v4150_v56 }
 0x46c   :  { %4090 = vmatprep.subr.mxu1 %v5380_v34  ;;  %3840 = vmatpush3.msra.mxu0 %v4151_v3 }
 0x46d   :  { %4091 = vmatpush3.msra.mxu1 %v4152_v55  ;;  %3841 = vmatprep.subr.mxu0 %v4153_v5 }
 0x46e   :  { %4092 = vmatprep.subr.mxu1 %v5380_v34  ;;  %3842 = vmatpush3.msra.mxu0 %v4154_v44 }
 0x46f   :  { %4093 = vmatpush3.msra.mxu1 %v4155_v33  ;;  %3843 = vmatprep.subr.mxu0 %v4156_v1 }
 0x470   :  { %4094 = vmatprep.subr.mxu1 %v5380_v34  ;;  %3844 = vmatpush3.msra.mxu0 %v4157_v50 }
 0x471   :  { %4095 = vmatpush3.msra.mxu1 %v4158_v52  ;;  %3845 = vmatprep.subr.mxu0 %v4159_v54 }
 0x472   :  { %4096 = vmatprep.subr.mxu1 %v5380_v34  ;;  %3846 = vmatpush3.msra.mxu0 %v4160_v39  ;;  %v4163_v34 = vld [vmem:[%s5315_s8 + $0x8] sm:$0xff] }
 0x473   :  { %4097 = vmatpush3.msra.mxu1 %v4161_v42  ;;  %3847 = vmatprep.subr.mxu0 %v4162_v59 }
 0x474   :  { %4099 = vmatmul.mubr.f32.vlgmr.msra.gmra.mxu1 %v3385_v43  ;;  %3848 = vmatpush3.msra.mxu0 %v4163_v34 }
 0x475   :  { %3849 = vmatprep.subr.mxu0 %v4164_v45 }
 0x476   :  { %3850 = vmatpush3.msra.mxu0 %v4165_v37 }
 0x477   :  { %3451 = vmatmul.mubr.f32.vlgmr.msra.gmra.mxu0 %v3383_v46 }
 0x513   :  { %v3379_v61 = vpop.f32.mrf.mxu1 }
 0x515   :  { %v4065_v32 = vpop.f32.mrf.mxu1 }
 0x517   :  { %v3799_v36 = vpop.f32.mrf.mxu0 }
 0x519   :  { %v3800_v4 = vpop.f32.mrf.mxu0 }
 0x51a   :  { %v3801_v63 = vadd.f32 %v3800_v4, %v3799_v36 }
 0x51c   :  { %v3380_v2 = vadd.f32 %v3801_v63, %v3379_v61 }
 0x51e   :  { %v3526_v11 = vmul.f32 0.00390625, %v3380_v2 }
 0x520   :  { %v3528_v14 = vmul.f32 %v3526_v11, %v3526_v11 }
 0x534   :  { %v3522_v0 = vpop.f32.mrf.mxu1 }
 0x536   :  { %v4100_v6 = vpop.f32.mrf.mxu1 }
 0x537   :  { %v3851_v8 = vpop.f32.mrf.mxu0 }
 0x539   :  { %v3852_v10 = vpop.f32.mrf.mxu0 }
 0x53a   :  { %v3853_v12 = vadd.f32 %v3852_v10, %v3851_v8 }
 0x53c   :  { %v3523_v13 = vadd.f32 %v3853_v12, %v3522_v0 }
 0x53e   :  { %v3527_v15 = vmul.f32 0.00390625, %v3523_v13 }
 0x540   :  { %v3529_v16 = vsub.f32 %v3527_v15, %v3528_v14 }
 0x542   :  { %v3530_v17 = vmax.f32 %v3529_v16, 0.0 }
 0x544   :  { %v3531_v18 = vadd.f32 1e-05, %v3530_v17 }
 0x546   :  { %4117 = vrsqrt.f32 %v3531_v18 }
 0x553   :  { %v4118_v20 = vpop.eup %4117 }
 0x554   :  { %v3533_v21 = vmul.f32 %v4118_v20, %v3241_v19 }
 0x556   :  { %3538 = vperm.xlu1 %4114, %v3533_v21   ;;  %v3534_v23 = vmul.f32 %v3533_v21, %v3526_v11 }
 0x558   :  { %v3535_v24 = vsub.f32 %v3242_v22, %v3534_v23 }
 0x55a   :  { %3546 = vperm.xlu0 %4113, %v3535_v24  }
 0x5d1   :  { %v3539_v25 = vpop.permute.xlu1 %3538 }
 0x5d2   :  { %v3541_v26 = vmul.f32 %v3539_v25, %v5129_v9  ;;  %v3542_v27 = vmul.f32 %v3539_v25, %v5122_v7  ;;  %v3543_v28 = vmul.f32 %v3539_v25, %v5119_v41 }
 0x5d5   :  { %v3547_v29 = vpop.permute.xlu0 %3546 }
 0x5d6   :  { %v3549_v30 = vadd.f32 %v3547_v29, %v3541_v26  ;;  %v3550_v31 = vadd.f32 %v3547_v29, %v3542_v27  ;;  %v3551_v35 = vadd.f32 %v3547_v29, %v3543_v28 }
 0x5d8   :  { %v3552_v38 = vmax.f32 %v3549_v30, 0.0  ;;  %v3553_v40 = vmax.f32 %v3550_v31, 0.0  ;;  %v3554_v47 = vmax.f32 %v3551_v35, 0.0 }
 0x5da   :  { %v3555_v48 = vmul.f32 %v3552_v38, %v4860_v51  ;;  %v3556_v49 = vmul.f32 %v3553_v40, %v4862_v57  ;;  %v3557_v58 = vmul.f32 %v3554_v47, %v4864_v62 }
 0x5dc   :  { %3558 = vst [vmem:[#allocation2] sm:$0xff] %v3555_v48  ;;  %3559 = vst [vmem:[#allocation2 + $0x8] sm:$0xff] %v3556_v49 }
 0x5dd   :  { %3560 = vst [vmem:[#allocation2 + $0x10] sm:$0xff] %v3557_v58 }
 0x5de   :  { %4177 = shalt.err (!%p4174_p4)
}
 0x5df   :  { %3570 = dma.vmem_to_hbm [thread:$0]  %s3568_s18, 384, %s5316_s9, [#allocation3]  }
 0x5e0   :  { %4186 = dma.done.wait [#allocation3], 384  }
 0x5e1   :  { %4187 = vsyncadd [#allocation3], 4294966912 }
 0x5e2   :  { %3574 = vsyncpa [#allocation3], 1 }

</bundles_post_ra>
